<compile_context>
chip_gen: v7x
topology: tpu7x:2x2x1
jax: 0.10.0
libtpu: 0.0.40
codegen_flags: <defaults>
</compile_context>

<pallas_src>
import functools

import jax
import jax.numpy as jnp
import numpy as np
from jax.experimental import pallas as pl
from jax.experimental.pallas import tpu as pltpu

_LANE = 128            # vreg lane width
_SUBLANE = 8           # f32 sublane count
_MAX_BATCH_TILE = 2048  # keeps live intermediates well inside v7x's 64 MiB VMEM
_INV_SQRT2 = float(1.0 / np.sqrt(2.0))


def _gelu_exact(x):
    # torch.nn.GELU() default: 0.5 * x * (1 + erf(x / sqrt(2)))
    # Python scalars are weakly typed -> result stays in x.dtype (f32 or bf16).
    return 0.5 * x * (1.0 + jax.lax.erf(x * _INV_SQRT2))


def _round_up(n, m):
    return ((n + m - 1) // m) * m


def decoder_kernel(x_ref,
                   w0, b0, w1, b1, w2, b2, w3, b3, w4, b4, w5, b5, w6, b6,
                   out_ref, xpad_ref, *, out_dim, matmul_dtype):
    """Full MLP chain for one batch tile: 7 MXU matmuls + bias/GELU."""
    in_dim = x_ref.shape[-1]
    in_dim_p = xpad_ref.shape[-1]

    if in_dim == in_dim_p:
        h = x_ref[...].astype(matmul_dtype)
    else:
        # Zero-extend the (batch_tile, in_dim) block to 128 lanes in VMEM so
        # the first matmul sees a lane-dense, guaranteed-zero-padded operand
        # (padding lanes hit zero weight rows -> numerics unchanged).
        xpad_ref[...] = jnp.zeros_like(xpad_ref)
        xpad_ref[:, :in_dim] = x_ref[...].astype(xpad_ref.dtype)
        h = xpad_ref[...]

    layers = ((w0, b0, True), (w1, b1, True), (w2, b2, True), (w3, b3, True),
              (w4, b4, True), (w5, b5, True), (w6, b6, False))
    for w_ref, b_ref, act in layers:
        # Matmul inputs in matmul_dtype (bf16 on the fast path), f32 accumulate.
        acc = jnp.dot(h, w_ref[...], preferred_element_type=jnp.float32)
        acc = acc + b_ref[...]                      # f32 bias add
        if act:
            # erf GELU (matches torch); evaluated in matmul_dtype so the bf16
            # fast path halves VALU work and feeds the next matmul directly.
            h = _gelu_exact(acc.astype(matmul_dtype))
        else:
            h = acc                                 # last layer: f32 result
    out_ref[...] = h[:, :out_dim].astype(out_ref.dtype)


def prepare_decoder_params(params, matmul_dtype=jnp.bfloat16):
    """Zero-pad all feature dims to multiples of 128 and cast weights to the
    matmul dtype.  Call ONCE (hoisted out of the per-call forward path).

    params: list of (W, b) with W shape (in, out), b shape (1, out) or (out,).
    """
    prepared = []
    for (w, b) in params:
        w = jnp.asarray(w, jnp.float32)
        b = jnp.reshape(jnp.asarray(b, jnp.float32), (1, -1))
        di, do = w.shape
        dip, dop = _round_up(di, _LANE), _round_up(do, _LANE)
        wp = jnp.zeros((dip, dop), jnp.float32).at[:di, :do].set(w)
        bp = jnp.zeros((1, dop), jnp.float32).at[:, :do].set(b)
        prepared.append((wp.astype(matmul_dtype), bp))   # bias stays f32
    return prepared


def decoder_forward(x, prepared_params, out_dim, *, batch_tile=None,
                    vmem_limit_bytes=48 * 1024 * 1024):
    """x: (B, class_dim + latent_dim) f32 or bf16.
    prepared_params: output of prepare_decoder_params.
    out_dim: unpadded output_dim of the final Linear."""
    B, in_dim = x.shape
    matmul_dtype = prepared_params[0][0].dtype
    in_dim_p = prepared_params[0][0].shape[0]

    # --- batch tiling --------------------------------------------------------
    # Big tiles amortize per-step overhead / weight pushes; >=2 steps (when
    # B > 8) lets the "parallel" grid axis shard across v7x's two TensorCores.
    # 2048 rows keeps live intermediates (< ~16 MiB) inside the 48 MiB budget.
    if batch_tile is None:
        n_steps = max(1, -(-B // _MAX_BATCH_TILE))
        if n_steps == 1 and B > _SUBLANE:
            n_steps = 2
        batch_tile = _round_up(-(-B // n_steps), _SUBLANE)
    else:
        batch_tile = _round_up(max(int(batch_tile), _SUBLANE), _SUBLANE)
    grid_steps = -(-B // batch_tile)
    B_p = grid_steps * batch_tile

    # Only batch padding (no feature padding) is materialized in HBM.
    x_p = jnp.pad(x, ((0, B_p - B), (0, 0))) if B_p != B else x

    weight_specs = []
    flat_params = []
    for (w, b) in prepared_params:
        # Constant (0, 0) index_map: block never changes across grid steps, so
        # the pipeline DMAs the weights once and keeps them resident.
        weight_specs.append(pl.BlockSpec(w.shape, lambda i: (0, 0)))
        weight_specs.append(pl.BlockSpec(b.shape, lambda i: (0, 0)))
        flat_params.extend([w, b])

    kernel = functools.partial(decoder_kernel, out_dim=out_dim,
                               matmul_dtype=matmul_dtype)

    out_p = pl.pallas_call(
        kernel,
        out_shape=jax.ShapeDtypeStruct((B_p, out_dim), jnp.float32),
        grid_spec=pltpu.PrefetchScalarGridSpec(
            num_scalar_prefetch=0,
            grid=(grid_steps,),
            in_specs=[pl.BlockSpec((batch_tile, in_dim), lambda i: (i, 0))]
                     + weight_specs,
            out_specs=pl.BlockSpec((batch_tile, out_dim), lambda i: (i, 0)),
            scratch_shapes=[pltpu.VMEM((batch_tile, in_dim_p), matmul_dtype)],
        ),
        compiler_params=pltpu.CompilerParams(
            dimension_semantics=("parallel",),
            vmem_limit_bytes=vmem_limit_bytes,
        ),
    )(x_p, *flat_params)

    # Strip batch padding only (output feature width is already exact).
    return out_p[:B] if B_p != B else out_p


def init_decoder_params(key, class_dim, latent_dim, output_dim):
    """Deterministic synthetic init (matches nn.Linear fan-in uniform)."""
    dims = [class_dim + latent_dim, latent_dim, 32, 64, 128, 256, 512, output_dim]
    params = []
    for i in range(len(dims) - 1):
        key, kw, kb = jax.random.split(key, 3)
        scale = 1.0 / np.sqrt(dims[i])
        w = jax.random.uniform(kw, (dims[i], dims[i + 1]), jnp.float32,
                               minval=-scale, maxval=scale)
        b = jax.random.uniform(kb, (1, dims[i + 1]), jnp.float32,
                               minval=-scale, maxval=scale)
        params.append((w, b))
    return params


def decoder_reference(x, params):
    """Pure-JAX f32 reference with torch Decoder semantics."""
    h = x
    n = len(params)
    for idx, (w, b) in enumerate(params):
        h = h @ w + b
        if idx < n - 1:        # GELU after every layer except the last Linear
            h = _gelu_exact(h)
    return h


if __name__ == "__main__":
    class_dim, latent_dim, output_dim = 4, 16, 48
    batch = 16

    key = jax.random.PRNGKey(0)
    key, kx = jax.random.split(key)
    x = jax.random.normal(kx, (batch, class_dim + latent_dim), jnp.float32)
    params = init_decoder_params(key, class_dim, latent_dim, output_dim)

    ref = decoder_reference(x, params)

    # 1) Exact path (f32 matmuls + f32 GELU): validates padding/tiling.
    prep_f32 = prepare_decoder_params(params, matmul_dtype=jnp.float32)
    out_f32 = jax.block_until_ready(decoder_forward(x, prep_f32, output_dim))
    np.testing.assert_allclose(np.asarray(out_f32), np.asarray(ref),
                               rtol=1e-5, atol=1e-5)

    # 2) Fast path (bf16 matmul inputs + bf16 GELU, f32 accumulation).
    prep_bf16 = prepare_decoder_params(params, matmul_dtype=jnp.bfloat16)
    out_bf16 = jax.block_until_ready(decoder_forward(x, prep_bf16, output_dim))
    np.testing.assert_allclose(np.asarray(out_bf16), np.asarray(ref),
                               rtol=5e-2, atol=5e-2)

    print("KERNEL_OK")
</pallas_src>

<mosaic_0001>
module attributes {stable_mosaic.version = 11 : i64} {
  func.func @decoder_kernel(%arg0: i32, %arg1: memref<8x20xf32, #tpu.memory_space<vmem>>, %arg2: memref<128x128xf32, #tpu.memory_space<vmem>>, %arg3: memref<1x128xf32, #tpu.memory_space<vmem>>, %arg4: memref<128x128xf32, #tpu.memory_space<vmem>>, %arg5: memref<1x128xf32, #tpu.memory_space<vmem>>, %arg6: memref<128x128xf32, #tpu.memory_space<vmem>>, %arg7: memref<1x128xf32, #tpu.memory_space<vmem>>, %arg8: memref<128x128xf32, #tpu.memory_space<vmem>>, %arg9: memref<1x128xf32, #tpu.memory_space<vmem>>, %arg10: memref<128x256xf32, #tpu.memory_space<vmem>>, %arg11: memref<1x256xf32, #tpu.memory_space<vmem>>, %arg12: memref<256x512xf32, #tpu.memory_space<vmem>>, %arg13: memref<1x512xf32, #tpu.memory_space<vmem>>, %arg14: memref<512x128xf32, #tpu.memory_space<vmem>>, %arg15: memref<1x128xf32, #tpu.memory_space<vmem>>, %arg16: memref<8x48xf32, #tpu.memory_space<vmem>>, %arg17: memref<8x128xf32, #tpu.memory_space<vmem>>) attributes {dimension_semantics = [#tpu.dimension_semantics<parallel>], iteration_bounds = array<i64: 2>, scalar_prefetch = 0 : i64, scratch_operands = 1 : i64, tpu.core_type = #tpu.core_type<tc>, window_params = [{transform_indices = @transform_0, window_bounds = array<i64: 8, 20>}, {pipeline_mode = #tpu.pipeline_mode<synchronous>, transform_indices = @transform_1, window_bounds = array<i64: 128, 128>}, {pipeline_mode = #tpu.pipeline_mode<synchronous>, transform_indices = @transform_2, window_bounds = array<i64: 1, 128>}, {pipeline_mode = #tpu.pipeline_mode<synchronous>, transform_indices = @transform_3, window_bounds = array<i64: 128, 128>}, {pipeline_mode = #tpu.pipeline_mode<synchronous>, transform_indices = @transform_4, window_bounds = array<i64: 1, 128>}, {pipeline_mode = #tpu.pipeline_mode<synchronous>, transform_indices = @transform_5, window_bounds = array<i64: 128, 128>}, {pipeline_mode = #tpu.pipeline_mode<synchronous>, transform_indices = @transform_6, window_bounds = array<i64: 1, 128>}, {pipeline_mode = #tpu.pipeline_mode<synchronous>, transform_indices = @transform_7, window_bounds = array<i64: 128, 128>}, {pipeline_mode = #tpu.pipeline_mode<synchronous>, transform_indices = @transform_8, window_bounds = array<i64: 1, 128>}, {pipeline_mode = #tpu.pipeline_mode<synchronous>, transform_indices = @transform_9, window_bounds = array<i64: 128, 256>}, {pipeline_mode = #tpu.pipeline_mode<synchronous>, transform_indices = @transform_10, window_bounds = array<i64: 1, 256>}, {pipeline_mode = #tpu.pipeline_mode<synchronous>, transform_indices = @transform_11, window_bounds = array<i64: 256, 512>}, {pipeline_mode = #tpu.pipeline_mode<synchronous>, transform_indices = @transform_12, window_bounds = array<i64: 1, 512>}, {pipeline_mode = #tpu.pipeline_mode<synchronous>, transform_indices = @transform_13, window_bounds = array<i64: 512, 128>}, {pipeline_mode = #tpu.pipeline_mode<synchronous>, transform_indices = @transform_14, window_bounds = array<i64: 1, 128>}, {transform_indices = @transform_15, window_bounds = array<i64: 8, 48>}]} {
    %cst = arith.constant 0.000000e+00 : f32
    %0 = vector.broadcast %cst : f32 to vector<8x128xf32>
    %c0 = arith.constant 0 : index
    %c0_0 = arith.constant 0 : index
    %1 = vector.load %arg17[%c0, %c0_0] : memref<8x128xf32, #tpu.memory_space<vmem>>, vector<8x128xf32>
    tpu.vector_store %arg17[%c0, %c0_0], %0 {strides = array<i32>} : memref<8x128xf32, #tpu.memory_space<vmem>>, vector<8x128xf32>,
    %c0_1 = arith.constant 0 : index
    %c0_2 = arith.constant 0 : index
    %2 = vector.load %arg1[%c0_1, %c0_2] : memref<8x20xf32, #tpu.memory_space<vmem>>, vector<8x20xf32>
    %c0_3 = arith.constant 0 : index
    %c0_4 = arith.constant 0 : index
    %3 = vector.load %arg17[%c0_3, %c0_4] : memref<8x128xf32, #tpu.memory_space<vmem>>, vector<8x20xf32>
    tpu.vector_store %arg17[%c0_3, %c0_4], %2 {strides = array<i32>} : memref<8x128xf32, #tpu.memory_space<vmem>>, vector<8x20xf32>,
    %c0_5 = arith.constant 0 : index
    %c0_6 = arith.constant 0 : index
    %4 = vector.load %arg17[%c0_5, %c0_6] : memref<8x128xf32, #tpu.memory_space<vmem>>, vector<8x128xf32>
    %c0_7 = arith.constant 0 : index
    %c0_8 = arith.constant 0 : index
    %5 = vector.load %arg2[%c0_7, %c0_8] : memref<128x128xf32, #tpu.memory_space<vmem>>, vector<128x128xf32>
    %cst_9 = arith.constant dense<0.000000e+00> : vector<8x128xf32>
    %6 = tpu.matmul %4, %5, %cst_9 {dimension_numbers = #tpu.dot_dimension_numbers<[1], [0], [0], [1], [0, 0, 1, 1], [], []>} : vector<8x128xf32>, vector<128x128xf32>, vector<8x128xf32> -> vector<8x128xf32>
    %c0_10 = arith.constant 0 : index
    %c0_11 = arith.constant 0 : index
    %7 = vector.load %arg3[%c0_10, %c0_11] : memref<1x128xf32, #tpu.memory_space<vmem>>, vector<1x128xf32>
    %8 = vector.broadcast %7 : vector<1x128xf32> to vector<8x128xf32>
    %9 = arith.addf %6, %8 : vector<8x128xf32>
    %cst_12 = arith.constant 5.000000e-01 : f32
    %10 = vector.broadcast %cst_12 : f32 to vector<8x128xf32>
    %11 = arith.mulf %10, %9 : vector<8x128xf32>
    %cst_13 = arith.constant 0.707106769 : f32
    %12 = vector.broadcast %cst_13 : f32 to vector<8x128xf32>
    %13 = arith.mulf %9, %12 : vector<8x128xf32>
    %14 = math.erf %13 : vector<8x128xf32>
    %cst_14 = arith.constant 1.000000e+00 : f32
    %15 = vector.broadcast %cst_14 : f32 to vector<8x128xf32>
    %16 = arith.addf %15, %14 : vector<8x128xf32>
    %17 = arith.mulf %11, %16 : vector<8x128xf32>
    %c0_15 = arith.constant 0 : index
    %c0_16 = arith.constant 0 : index
    %18 = vector.load %arg4[%c0_15, %c0_16] : memref<128x128xf32, #tpu.memory_space<vmem>>, vector<128x128xf32>
    %cst_17 = arith.constant dense<0.000000e+00> : vector<8x128xf32>
    %19 = tpu.matmul %17, %18, %cst_17 {dimension_numbers = #tpu.dot_dimension_numbers<[1], [0], [0], [1], [0, 0, 1, 1], [], []>} : vector<8x128xf32>, vector<128x128xf32>, vector<8x128xf32> -> vector<8x128xf32>
    %c0_18 = arith.constant 0 : index
    %c0_19 = arith.constant 0 : index
    %20 = vector.load %arg5[%c0_18, %c0_19] : memref<1x128xf32, #tpu.memory_space<vmem>>, vector<1x128xf32>
    %21 = vector.broadcast %20 : vector<1x128xf32> to vector<8x128xf32>
    %22 = arith.addf %19, %21 : vector<8x128xf32>
    %cst_20 = arith.constant 5.000000e-01 : f32
    %23 = vector.broadcast %cst_20 : f32 to vector<8x128xf32>
    %24 = arith.mulf %23, %22 : vector<8x128xf32>
    %cst_21 = arith.constant 0.707106769 : f32
    %25 = vector.broadcast %cst_21 : f32 to vector<8x128xf32>
    %26 = arith.mulf %22, %25 : vector<8x128xf32>
    %27 = math.erf %26 : vector<8x128xf32>
    %cst_22 = arith.constant 1.000000e+00 : f32
    %28 = vector.broadcast %cst_22 : f32 to vector<8x128xf32>
    %29 = arith.addf %28, %27 : vector<8x128xf32>
    %30 = arith.mulf %24, %29 : vector<8x128xf32>
    %c0_23 = arith.constant 0 : index
    %c0_24 = arith.constant 0 : index
    %31 = vector.load %arg6[%c0_23, %c0_24] : memref<128x128xf32, #tpu.memory_space<vmem>>, vector<128x128xf32>
    %cst_25 = arith.constant dense<0.000000e+00> : vector<8x128xf32>
    %32 = tpu.matmul %30, %31, %cst_25 {dimension_numbers = #tpu.dot_dimension_numbers<[1], [0], [0], [1], [0, 0, 1, 1], [], []>} : vector<8x128xf32>, vector<128x128xf32>, vector<8x128xf32> -> vector<8x128xf32>
    %c0_26 = arith.constant 0 : index
    %c0_27 = arith.constant 0 : index
    %33 = vector.load %arg7[%c0_26, %c0_27] : memref<1x128xf32, #tpu.memory_space<vmem>>, vector<1x128xf32>
    %34 = vector.broadcast %33 : vector<1x128xf32> to vector<8x128xf32>
    %35 = arith.addf %32, %34 : vector<8x128xf32>
    %cst_28 = arith.constant 5.000000e-01 : f32
    %36 = vector.broadcast %cst_28 : f32 to vector<8x128xf32>
    %37 = arith.mulf %36, %35 : vector<8x128xf32>
    %cst_29 = arith.constant 0.707106769 : f32
    %38 = vector.broadcast %cst_29 : f32 to vector<8x128xf32>
    %39 = arith.mulf %35, %38 : vector<8x128xf32>
    %40 = math.erf %39 : vector<8x128xf32>
    %cst_30 = arith.constant 1.000000e+00 : f32
    %41 = vector.broadcast %cst_30 : f32 to vector<8x128xf32>
    %42 = arith.addf %41, %40 : vector<8x128xf32>
    %43 = arith.mulf %37, %42 : vector<8x128xf32>
    %c0_31 = arith.constant 0 : index
    %c0_32 = arith.constant 0 : index
    %44 = vector.load %arg8[%c0_31, %c0_32] : memref<128x128xf32, #tpu.memory_space<vmem>>, vector<128x128xf32>
    %cst_33 = arith.constant dense<0.000000e+00> : vector<8x128xf32>
    %45 = tpu.matmul %43, %44, %cst_33 {dimension_numbers = #tpu.dot_dimension_numbers<[1], [0], [0], [1], [0, 0, 1, 1], [], []>} : vector<8x128xf32>, vector<128x128xf32>, vector<8x128xf32> -> vector<8x128xf32>
    %c0_34 = arith.constant 0 : index
    %c0_35 = arith.constant 0 : index
    %46 = vector.load %arg9[%c0_34, %c0_35] : memref<1x128xf32, #tpu.memory_space<vmem>>, vector<1x128xf32>
    %47 = vector.broadcast %46 : vector<1x128xf32> to vector<8x128xf32>
    %48 = arith.addf %45, %47 : vector<8x128xf32>
    %cst_36 = arith.constant 5.000000e-01 : f32
    %49 = vector.broadcast %cst_36 : f32 to vector<8x128xf32>
    %50 = arith.mulf %49, %48 : vector<8x128xf32>
    %cst_37 = arith.constant 0.707106769 : f32
    %51 = vector.broadcast %cst_37 : f32 to vector<8x128xf32>
    %52 = arith.mulf %48, %51 : vector<8x128xf32>
    %53 = math.erf %52 : vector<8x128xf32>
    %cst_38 = arith.constant 1.000000e+00 : f32
    %54 = vector.broadcast %cst_38 : f32 to vector<8x128xf32>
    %55 = arith.addf %54, %53 : vector<8x128xf32>
    %56 = arith.mulf %50, %55 : vector<8x128xf32>
    %c0_39 = arith.constant 0 : index
    %c0_40 = arith.constant 0 : index
    %57 = vector.load %arg10[%c0_39, %c0_40] : memref<128x256xf32, #tpu.memory_space<vmem>>, vector<128x256xf32>
    %cst_41 = arith.constant dense<0.000000e+00> : vector<8x256xf32>
    %58 = tpu.matmul %56, %57, %cst_41 {dimension_numbers = #tpu.dot_dimension_numbers<[1], [0], [0], [1], [0, 0, 1, 1], [], []>} : vector<8x128xf32>, vector<128x256xf32>, vector<8x256xf32> -> vector<8x256xf32>
    %c0_42 = arith.constant 0 : index
    %c0_43 = arith.constant 0 : index
    %59 = vector.load %arg11[%c0_42, %c0_43] : memref<1x256xf32, #tpu.memory_space<vmem>>, vector<1x256xf32>
    %60 = vector.broadcast %59 : vector<1x256xf32> to vector<8x256xf32>
    %61 = arith.addf %58, %60 : vector<8x256xf32>
    %cst_44 = arith.constant 5.000000e-01 : f32
    %62 = vector.broadcast %cst_44 : f32 to vector<8x256xf32>
    %63 = arith.mulf %62, %61 : vector<8x256xf32>
    %cst_45 = arith.constant 0.707106769 : f32
    %64 = vector.broadcast %cst_45 : f32 to vector<8x256xf32>
    %65 = arith.mulf %61, %64 : vector<8x256xf32>
    %66 = math.erf %65 : vector<8x256xf32>
    %cst_46 = arith.constant 1.000000e+00 : f32
    %67 = vector.broadcast %cst_46 : f32 to vector<8x256xf32>
    %68 = arith.addf %67, %66 : vector<8x256xf32>
    %69 = arith.mulf %63, %68 : vector<8x256xf32>
    %c0_47 = arith.constant 0 : index
    %c0_48 = arith.constant 0 : index
    %70 = vector.load %arg12[%c0_47, %c0_48] : memref<256x512xf32, #tpu.memory_space<vmem>>, vector<256x512xf32>
    %cst_49 = arith.constant dense<0.000000e+00> : vector<8x512xf32>
    %71 = tpu.matmul %69, %70, %cst_49 {dimension_numbers = #tpu.dot_dimension_numbers<[1], [0], [0], [1], [0, 0, 1, 1], [], []>} : vector<8x256xf32>, vector<256x512xf32>, vector<8x512xf32> -> vector<8x512xf32>
    %c0_50 = arith.constant 0 : index
    %c0_51 = arith.constant 0 : index
    %72 = vector.load %arg13[%c0_50, %c0_51] : memref<1x512xf32, #tpu.memory_space<vmem>>, vector<1x512xf32>
    %73 = vector.broadcast %72 : vector<1x512xf32> to vector<8x512xf32>
    %74 = arith.addf %71, %73 : vector<8x512xf32>
    %cst_52 = arith.constant 5.000000e-01 : f32
    %75 = vector.broadcast %cst_52 : f32 to vector<8x512xf32>
    %76 = arith.mulf %75, %74 : vector<8x512xf32>
    %cst_53 = arith.constant 0.707106769 : f32
    %77 = vector.broadcast %cst_53 : f32 to vector<8x512xf32>
    %78 = arith.mulf %74, %77 : vector<8x512xf32>
    %79 = math.erf %78 : vector<8x512xf32>
    %cst_54 = arith.constant 1.000000e+00 : f32
    %80 = vector.broadcast %cst_54 : f32 to vector<8x512xf32>
    %81 = arith.addf %80, %79 : vector<8x512xf32>
    %82 = arith.mulf %76, %81 : vector<8x512xf32>
    %c0_55 = arith.constant 0 : index
    %c0_56 = arith.constant 0 : index
    %83 = vector.load %arg14[%c0_55, %c0_56] : memref<512x128xf32, #tpu.memory_space<vmem>>, vector<512x128xf32>
    %cst_57 = arith.constant dense<0.000000e+00> : vector<8x128xf32>
    %84 = tpu.matmul %82, %83, %cst_57 {dimension_numbers = #tpu.dot_dimension_numbers<[1], [0], [0], [1], [0, 0, 1, 1], [], []>} : vector<8x512xf32>, vector<512x128xf32>, vector<8x128xf32> -> vector<8x128xf32>
    %c0_58 = arith.constant 0 : index
    %c0_59 = arith.constant 0 : index
    %85 = vector.load %arg15[%c0_58, %c0_59] : memref<1x128xf32, #tpu.memory_space<vmem>>, vector<1x128xf32>
    %86 = vector.broadcast %85 : vector<1x128xf32> to vector<8x128xf32>
    %87 = arith.addf %84, %86 : vector<8x128xf32>
    %88 = vector.extract_strided_slice %87 {offsets = [0, 0], sizes = [8, 48], strides = [1, 1]} : vector<8x128xf32> to vector<8x48xf32>
    %c0_60 = arith.constant 0 : index
    %c0_61 = arith.constant 0 : index
    %89 = vector.load %arg16[%c0_60, %c0_61] : memref<8x48xf32, #tpu.memory_space<vmem>>, vector<8x48xf32>
    tpu.vector_store %arg16[%c0_60, %c0_61], %88 {strides = array<i32>} : memref<8x48xf32, #tpu.memory_space<vmem>>, vector<8x48xf32>,
    return
  }
  func.func @transform_0(%arg0: i32) -> (i32, i32) {
    %c0_i32 = arith.constant 0 : i32
    %c0_i32_0 = arith.constant 0 : i32
    return %arg0, %c0_i32 : i32, i32
  }
  func.func @transform_1(%arg0: i32) -> (i32, i32) {
    %c0_i32 = arith.constant 0 : i32
    %c0_i32_0 = arith.constant 0 : i32
    %c0_i32_1 = arith.constant 0 : i32
    return %c0_i32, %c0_i32_0 : i32, i32
  }
  func.func @transform_2(%arg0: i32) -> (i32, i32) {
    %c0_i32 = arith.constant 0 : i32
    %c0_i32_0 = arith.constant 0 : i32
    %c0_i32_1 = arith.constant 0 : i32
    return %c0_i32, %c0_i32_0 : i32, i32
  }
  func.func @transform_3(%arg0: i32) -> (i32, i32) {
    %c0_i32 = arith.constant 0 : i32
    %c0_i32_0 = arith.constant 0 : i32
    %c0_i32_1 = arith.constant 0 : i32
    return %c0_i32, %c0_i32_0 : i32, i32
  }
  func.func @transform_4(%arg0: i32) -> (i32, i32) {
    %c0_i32 = arith.constant 0 : i32
    %c0_i32_0 = arith.constant 0 : i32
    %c0_i32_1 = arith.constant 0 : i32
    return %c0_i32, %c0_i32_0 : i32, i32
  }
  func.func @transform_5(%arg0: i32) -> (i32, i32) {
    %c0_i32 = arith.constant 0 : i32
    %c0_i32_0 = arith.constant 0 : i32
    %c0_i32_1 = arith.constant 0 : i32
    return %c0_i32, %c0_i32_0 : i32, i32
  }
  func.func @transform_6(%arg0: i32) -> (i32, i32) {
    %c0_i32 = arith.constant 0 : i32
    %c0_i32_0 = arith.constant 0 : i32
    %c0_i32_1 = arith.constant 0 : i32
    return %c0_i32, %c0_i32_0 : i32, i32
  }
  func.func @transform_7(%arg0: i32) -> (i32, i32) {
    %c0_i32 = arith.constant 0 : i32
    %c0_i32_0 = arith.constant 0 : i32
    %c0_i32_1 = arith.constant 0 : i32
    return %c0_i32, %c0_i32_0 : i32, i32
  }
  func.func @transform_8(%arg0: i32) -> (i32, i32) {
    %c0_i32 = arith.constant 0 : i32
    %c0_i32_0 = arith.constant 0 : i32
    %c0_i32_1 = arith.constant 0 : i32
    return %c0_i32, %c0_i32_0 : i32, i32
  }
  func.func @transform_9(%arg0: i32) -> (i32, i32) {
    %c0_i32 = arith.constant 0 : i32
    %c0_i32_0 = arith.constant 0 : i32
    %c0_i32_1 = arith.constant 0 : i32
    return %c0_i32, %c0_i32_0 : i32, i32
  }
  func.func @transform_10(%arg0: i32) -> (i32, i32) {
    %c0_i32 = arith.constant 0 : i32
    %c0_i32_0 = arith.constant 0 : i32
    %c0_i32_1 = arith.constant 0 : i32
    return %c0_i32, %c0_i32_0 : i32, i32
  }
  func.func @transform_11(%arg0: i32) -> (i32, i32) {
    %c0_i32 = arith.constant 0 : i32
    %c0_i32_0 = arith.constant 0 : i32
    %c0_i32_1 = arith.constant 0 : i32
    return %c0_i32, %c0_i32_0 : i32, i32
  }
  func.func @transform_12(%arg0: i32) -> (i32, i32) {
    %c0_i32 = arith.constant 0 : i32
    %c0_i32_0 = arith.constant 0 : i32
    %c0_i32_1 = arith.constant 0 : i32
    return %c0_i32, %c0_i32_0 : i32, i32
  }
  func.func @transform_13(%arg0: i32) -> (i32, i32) {
    %c0_i32 = arith.constant 0 : i32
    %c0_i32_0 = arith.constant 0 : i32
    %c0_i32_1 = arith.constant 0 : i32
    return %c0_i32, %c0_i32_0 : i32, i32
  }
  func.func @transform_14(%arg0: i32) -> (i32, i32) {
    %c0_i32 = arith.constant 0 : i32
    %c0_i32_0 = arith.constant 0 : i32
    %c0_i32_1 = arith.constant 0 : i32
    return %c0_i32, %c0_i32_0 : i32, i32
  }
  func.func @transform_15(%arg0: i32) -> (i32, i32) {
    %c0_i32 = arith.constant 0 : i32
    %c0_i32_0 = arith.constant 0 : i32
    return %arg0, %c0_i32 : i32, i32
  }
}

</mosaic_0001>

<bundles_post_ra>
// kernel: tpu_custom_call.1
= control target key start
LH: loop header
LB: loop body
LE: loop exit
PB: predicated region body
PF: predicated region fallthrough
CT: control target
= control target key end

     0   :  { %s3425_s0 = inlined_call_operand.hbm [shape: f32[16,20], index: 0, kind: input, shape index: {}]   ;;  %s3426_s1 = inlined_call_operand.hbm [shape: f32[128,128], index: 1, kind: input, shape index: {}]   ;;  %s3427_s2 = inlined_call_operand.vmem [shape: f32[1,128], index: 2, kind: input, shape index: {}]   ;;  %s3428_s3 = inlined_call_operand.hbm [shape: f32[128,128], index: 3, kind: input, shape index: {}]   ;;  %s3429_s4 = inlined_call_operand.vmem [shape: f32[1,128], index: 4, kind: input, shape index: {}]   ;;  %s3430_s5 = inlined_call_operand.hbm [shape: f32[128,128], index: 5, kind: input, shape index: {}]   ;;  %s3431_s6 = inlined_call_operand.vmem [shape: f32[1,128], index: 6, kind: input, shape index: {}]   ;;  %s3432_s7 = inlined_call_operand.hbm [shape: f32[128,128], index: 7, kind: input, shape index: {}]   ;;  %s3433_s8 = inlined_call_operand.vmem [shape: f32[1,128], index: 8, kind: input, shape index: {}]   ;;  %s3434_s9 = inlined_call_operand.hbm [shape: f32[128,256], index: 9, kind: input, shape index: {}]   ;;  %s3435_s10 = inlined_call_operand.vmem [shape: f32[1,256], index: 10, kind: input, shape index: {}]   ;;  %s3436_s11 = inlined_call_operand.hbm [shape: f32[256,512], index: 11, kind: input, shape index: {}]   ;;  %s3437_s12 = inlined_call_operand.vmem [shape: f32[1,512], index: 12, kind: input, shape index: {}]   ;;  %s3438_s13 = inlined_call_operand.hbm [shape: f32[512,128], index: 13, kind: input, shape index: {}]   ;;  %s3439_s14 = inlined_call_operand.vmem [shape: f32[1,128], index: 14, kind: input, shape index: {}]   ;;  %s3440_s15 = inlined_call_operand.hbm [shape: f32[16,48], index: 15, kind: output, shape index: {}]  }
   0x1   :  { %3449 = sst [smem:[#allocation24_spill]] %s3426_s1 }
   0x2   :  { %3450 = sst [smem:[#allocation25_spill]] %s3429_s4 }
   0x3   :  { %3451 = sst [smem:[#allocation26_spill]] %s3430_s5 }
   0x4   :  { %3452 = sst [smem:[#allocation27_spill]] %s3431_s6 }
   0x5   :  { %3453 = sst [smem:[#allocation28_spill]] %s3433_s8 }
   0x6   :  { %3454 = sst [smem:[#allocation29_spill]] %s3435_s10 }
   0x7   :  { %3455 = sst [smem:[#allocation30_spill]] %s3437_s12 }
   0x8   :  { %3456 = sst [smem:[#allocation31_spill]] %s3439_s14 }
   0x9   :  { %3457 = sst [smem:[#allocation32_spill]] %s3440_s15 }
   0xa   :  { %20 = vsyncpa [#allocation4], 0 }
   0xb   :  { %22 = vsyncpa [#allocation4 + $0x1], 0 }
   0xc   :  { %23 = vsyncpa [#allocation7], 0 }
   0xd   :  { %24 = vsyncpa [#allocation10], 0 }
   0xe   :  { %25 = vsyncpa [#allocation13], 0 }
   0xf   :  { %26 = vsyncpa [#allocation16], 0 }
  0x10   :  { %27 = vsyncpa [#allocation5], 0 }
  0x11   :  { %29 = vsyncpa [#allocation5 + $0x1], 0  ;;  %s2993_s18 = smov 0   ;;  %s2995_s19 = smov 0  }
  0x12   :  { %s2997_s20 = smov 0   ;;  %s2999_s21 = smov 0  }
  0x13 LB: > { %s2895_s22 = smov [#allocation6]   ;;  %s3014_s24 = sadd.s32 4294967295, %s2893_s21   ;;  %s2893_s21 = sphi %s2999_s21, %s3492_s21   ;;  %s2889_s20 = sphi %s2997_s20, %s3491_s20   ;;  %s2885_s19 = sphi %s2995_s19, %s3490_s19   ;;  %s2881_s18 = sphi %s2993_s18, %s3489_s18  }
  0x14   : > { %s398_s23 = sshll.u32 %s2895_s22, 4  ;;  %p1811_p0 = scmp.ge.s32.totalorder %s2893_s21, 1  ;;  %s3019_s23 = int_to_ptr.vmem [resolvable:$true] %s398_s23 }
  0x15   : > { %p3446_p1 = scmp.eq.s32.totalorder %s3014_s24, 0  ;;  %p386_p2 = scmp.lt.s32.totalorder %s2893_s21, 3 }
  0x16   : > { %s2896_s26 = smov [#allocation9]   ;;  %s2897_s29 = smov [#allocation12]  }
  0x17   : > { %p3021_p3 = pnand %p1811_p0, %p386_p2  ;;  %s430_s27 = sshll.u32 %s2896_s26, 4  ;;  %s3034_s27 = int_to_ptr.vmem [resolvable:$true] %s430_s27 }
  0x18   : > { %s462_s30 = sshll.u32 %s2897_s29, 4  ;;  %s3460_s1 = sld [smem:[#allocation24_spill]]  ;;  %s3036_s30 = int_to_ptr.vmem [resolvable:$true] %s462_s30 }
  0x19   : > { %s3458_s25 = scalar_select %p3021_p3, 1, 0 }
  0x1a   : > { %p2471_p5 = pneg %p3021_p3 }
  0x1c   : > { %p3030_p6 = pnand %p2471_p5, %p3446_p1 }
  0x1e   : > { %s2585_s22 = scalar_lea.hbm %s3460_s1, 2048  ;;  %p3046_p8 = pneg %p3030_p6 }
  0x1f   : > { %p2586_p7 = scmp.ne.s32.totalorder %s3460_s1, %s2585_s22  ;;  %p2592_p11 = scmp.lt.u32.totalorder %s2585_s22, %s3460_s1 }
  0x21   : > { %p2588_p9 = pnand %p3046_p8, %p2586_p7 }
  0x23   : > { %p2589_p10 = pneg %p2588_p9 }
  0x25   : > { %p2594_p12 = pnand %p2592_p11, %p2589_p10 }
  0x27   : > { %2597 = shalt.err (!%p2594_p12)
}
  0x28   : > { %s2598_s14 = scalar_lea.vmem %s3019_s23, 2048  ;;  %p2606_p5 = scmp.lt.s32.totalorder %s3019_s23, %s3019_s23 }
  0x29   : > { %p2599_p13 = scmp.ne.s32.totalorder %s3019_s23, %s2598_s14  ;;  %p2607_p4 = scmp.lt.s32.totalorder %s2598_s14, %s2598_s14 }
  0x2b   : > { %p2601_p0 = pnand %p2599_p13, %p3046_p8  ;;  %p2608_p7 = por %p2607_p4, %p2606_p5 }
  0x2d   : > { %p2602_p2 = pneg %p2601_p0 }
  0x2f   : > { %p2609_p9 = pnand %p2608_p7, %p2602_p2 }
  0x31   : > { %2612 = shalt.err (!%p2609_p9)
}
  0x32   : > { %s3442_s15 = smov 128   ;;  %s3444_s12 = smov 8  }
  0x33   : > { %2474 = dma.hbm_to_vmem [thread:$0]  (!%p3030_p6), %s3460_s1, 2048, %s3019_s23, [#allocation7], %s3442_s15, %s3442_s15, %s3444_s12  }
  0x34   : > { %s3462_s5 = sld [smem:[#allocation26_spill]] }
  0x3a   : > { %s2613_s14 = scalar_lea.hbm %s3462_s5, 2048 }
  0x3b   : > { %p2614_p4 = scmp.ne.s32.totalorder %s3462_s5, %s2613_s14  ;;  %p2620_p12 = scmp.lt.u32.totalorder %s2613_s14, %s3462_s5 }
  0x3d   : > { %p2616_p10 = pnand %p2614_p4, %p3046_p8 }
  0x3f   : > { %p2617_p11 = pneg %p2616_p10 }
  0x41   : > { %p2622_p13 = pnand %p2620_p12, %p2617_p11 }
  0x43   : > { %2625 = shalt.err (!%p2622_p13)
}
  0x44   : > { %s2626_s23 = scalar_lea.vmem %s3034_s27, 2048  ;;  %p2634_p7 = scmp.lt.s32.totalorder %s3034_s27, %s3034_s27 }
  0x45   : > { %p2627_p0 = scmp.ne.s32.totalorder %s3034_s27, %s2626_s23  ;;  %p2635_p9 = scmp.lt.s32.totalorder %s2626_s23, %s2626_s23 }
  0x47   : > { %p2629_p2 = pnand %p2627_p0, %p3046_p8  ;;  %p2636_p4 = por %p2635_p9, %p2634_p7 }
  0x49   : > { %p2630_p5 = pneg %p2629_p2 }
  0x4b   : > { %p2637_p10 = pnand %p2636_p4, %p2630_p5 }
  0x4d   : > { %2640 = shalt.err (!%p2637_p10)
}
  0x4e   : > { %2480 = dma.hbm_to_vmem [thread:$0]  (!%p3030_p6), %s3462_s5, 2048, %s3034_s27, [#allocation10], %s3442_s15, %s3442_s15, %s3444_s12  }
  0x4f   : > { %s2641_s16 = scalar_lea.hbm %s3434_s9, 4096 }
  0x50   : > { %p2642_p11 = scmp.ne.s32.totalorder %s3434_s9, %s2641_s16  ;;  %p2648_p0 = scmp.lt.u32.totalorder %s2641_s16, %s3434_s9 }
  0x52   : > { %p2644_p12 = pnand %p2642_p11, %p3046_p8 }
  0x54   : > { %p2645_p13 = pneg %p2644_p12 }
  0x56   : > { %p2650_p2 = pnand %p2648_p0, %p2645_p13 }
  0x58   : > { %2653 = shalt.err (!%p2650_p2)
}
  0x59   : > { %s2654_s27 = scalar_lea.vmem %s3036_s30, 4096  ;;  %p2662_p4 = scmp.lt.s32.totalorder %s3036_s30, %s3036_s30 }
  0x5a   : > { %p2655_p5 = scmp.ne.s32.totalorder %s3036_s30, %s2654_s27  ;;  %p2663_p10 = scmp.lt.s32.totalorder %s2654_s27, %s2654_s27 }
  0x5c   : > { %p2657_p7 = pnand %p2655_p5, %p3046_p8  ;;  %p2664_p11 = por %p2663_p10, %p2662_p4 }
  0x5e   : > { %p2658_p9 = pneg %p2657_p7 }
  0x60   : > { %p2665_p12 = pnand %p2664_p11, %p2658_p9 }
  0x62   : > { %2668 = shalt.err (!%p2665_p12)
}
  0x63   : > { %s2900_s23 = smov 256   ;;  %s2901_s4 = smov 16  }
  0x64   : > { %2486 = dma.hbm_to_vmem [thread:$0]  (!%p3030_p6), %s3434_s9, 4096, %s3036_s30, [#allocation13], %s2900_s23, %s2900_s23, %s2901_s4  }
  0x65   : > { %s2902_s10 = smov [#allocation8]   ;;  %s2903_s17 = smov [#allocation11]  }
  0x66   : > { %s414_s16 = sshll.u32 %s2902_s10, 4  ;;  %s446_s22 = sshll.u32 %s2903_s17, 4  ;;  %s415_s16 = int_to_ptr.vmem [resolvable:$true] %s414_s16  ;;  %s447_s22 = int_to_ptr.vmem [resolvable:$true] %s446_s22 }
  0x67   : > { %s2669_s27 = scalar_lea.hbm %s3428_s3, 2048 }
  0x68   : > { %p2670_p13 = scmp.ne.s32.totalorder %s3428_s3, %s2669_s27  ;;  %p2676_p5 = scmp.lt.u32.totalorder %s2669_s27, %s3428_s3 }
  0x6a   : > { %p2672_p0 = pnand %p2670_p13, %p3046_p8 }
  0x6c   : > { %p2673_p2 = pneg %p2672_p0 }
  0x6e   : > { %p2678_p7 = pnand %p2676_p5, %p2673_p2 }
  0x70   : > { %2681 = shalt.err (!%p2678_p7)
}
  0x71   : > { %s2682_s30 = scalar_lea.vmem %s415_s16, 2048  ;;  %p2690_p11 = scmp.lt.s32.totalorder %s415_s16, %s415_s16 }
  0x72   : > { %p2683_p9 = scmp.ne.s32.totalorder %s415_s16, %s2682_s30  ;;  %p2691_p12 = scmp.lt.s32.totalorder %s2682_s30, %s2682_s30 }
  0x74   : > { %p2685_p4 = pnand %p2683_p9, %p3046_p8  ;;  %p2692_p1 = por %p2691_p12, %p2690_p11 }
  0x76   : > { %p2686_p10 = pneg %p2685_p4 }
  0x78   : > { %p2693_p3 = pnand %p2692_p1, %p2686_p10 }
  0x7a   : > { %2696 = shalt.err (!%p2693_p3)
}
  0x7b   : > { %s3463_s15 = smov 8   ;;  %s3464_s12 = smov 128  }
  0x7c   : > { %2477 = dma.hbm_to_vmem [thread:$0]  (!%p3030_p6), %s3428_s3, 2048, %s415_s16, [#allocation7], %s3464_s12, %s3464_s12, %s3463_s15  }
  0x7d   : > { %s2697_s6 = scalar_lea.hbm %s3432_s7, 2048 }
  0x7e   : > { %p2698_p1 = scmp.ne.s32.totalorder %s3432_s7, %s2697_s6  ;;  %p2704_p0 = scmp.lt.u32.totalorder %s2697_s6, %s3432_s7 }
  0x80   : > { %p2700_p3 = pnand %p2698_p1, %p3046_p8 }
  0x82   : > { %p2701_p13 = pneg %p2700_p3 }
  0x84   : > { %p2706_p2 = pnand %p2704_p0, %p2701_p13 }
  0x86   : > { %2709 = shalt.err (!%p2706_p2)
}
  0x87   : > { %s2710_s14 = scalar_lea.vmem %s447_s22, 2048  ;;  %p2718_p4 = scmp.lt.s32.totalorder %s447_s22, %s447_s22 }
  0x88   : > { %p2711_p5 = scmp.ne.s32.totalorder %s447_s22, %s2710_s14  ;;  %p2719_p10 = scmp.lt.s32.totalorder %s2710_s14, %s2710_s14 }
  0x8a   : > { %p2713_p7 = pnand %p2711_p5, %p3046_p8  ;;  %p2720_p11 = por %p2719_p10, %p2718_p4 }
  0x8c   : > { %p2714_p9 = pneg %p2713_p7 }
  0x8e   : > { %p2721_p12 = pnand %p2720_p11, %p2714_p9 }
  0x90   : > { %2724 = shalt.err (!%p2721_p12)
}
  0x91   : > { %2483 = dma.hbm_to_vmem [thread:$0]  (!%p3030_p6), %s3432_s7, 2048, %s447_s22, [#allocation10], %s3464_s12, %s3464_s12, %s3463_s15  }
  0x92   : > { %s2904_s30 = smov [#allocation14]   ;;  %s2725_s4 = scalar_lea.hbm %s3436_s11, 16384 }
  0x93   : > { %s478_s1 = sshll.u32 %s2904_s30, 4  ;;  %p2726_p1 = scmp.ne.s32.totalorder %s3436_s11, %s2725_s4  ;;  %s479_s1 = int_to_ptr.vmem [resolvable:$true] %s478_s1 }
  0x94   : > { %p2732_p0 = scmp.lt.u32.totalorder %s2725_s4, %s3436_s11 }
  0x95   : > { %p2728_p3 = pnand %p2726_p1, %p3046_p8 }
  0x97   : > { %p2729_p13 = pneg %p2728_p3 }
  0x99   : > { %p2734_p2 = pnand %p2732_p0, %p2729_p13 }
  0x9b   : > { %2737 = shalt.err (!%p2734_p2)
}
  0x9c   : > { %s2738_s22 = scalar_lea.vmem %s479_s1, 16384  ;;  %p2746_p4 = scmp.lt.s32.totalorder %s479_s1, %s479_s1 }
  0x9d   : > { %p2739_p5 = scmp.ne.s32.totalorder %s479_s1, %s2738_s22  ;;  %p2747_p10 = scmp.lt.s32.totalorder %s2738_s22, %s2738_s22 }
  0x9f   : > { %p2741_p7 = pnand %p2739_p5, %p3046_p8  ;;  %p2748_p11 = por %p2747_p10, %p2746_p4 }
  0xa1   : > { %p2742_p9 = pneg %p2741_p7 }
  0xa3   : > { %p2749_p12 = pnand %p2748_p11, %p2742_p9 }
  0xa5   : > { %2752 = shalt.err (!%p2749_p12)
}
  0xa6   : > { %s2905_s29 = smov 512   ;;  %s2906_s14 = smov 32  }
  0xa7   : > { %2489 = dma.hbm_to_vmem [thread:$0]  (!%p3030_p6), %s3436_s11, 16384, %s479_s1, [#allocation13], %s2905_s29, %s2905_s29, %s2906_s14  }
  0xa8   : > { %s2907_s30 = smov [#allocation15]   ;;  %s2753_s6 = scalar_lea.hbm %s3438_s13, 8192 }
  0xa9   : > { %s494_s5 = sshll.u32 %s2907_s30, 4  ;;  %p2754_p1 = scmp.ne.s32.totalorder %s3438_s13, %s2753_s6  ;;  %s495_s5 = int_to_ptr.vmem [resolvable:$true] %s494_s5 }
  0xaa   : > { %p2760_p0 = scmp.lt.u32.totalorder %s2753_s6, %s3438_s13 }
  0xab   : > { %p2756_p3 = pnand %p2754_p1, %p3046_p8 }
  0xad   : > { %p2757_p13 = pneg %p2756_p3 }
  0xaf   : > { %p2762_p2 = pnand %p2760_p0, %p2757_p13 }
  0xb1   : > { %2765 = shalt.err (!%p2762_p2)
}
  0xb2   : > { %s2766_s1 = scalar_lea.vmem %s495_s5, 8192  ;;  %p2774_p4 = scmp.lt.s32.totalorder %s495_s5, %s495_s5 }
  0xb3   : > { %p2767_p5 = scmp.ne.s32.totalorder %s495_s5, %s2766_s1  ;;  %p2775_p10 = scmp.lt.s32.totalorder %s2766_s1, %s2766_s1 }
  0xb5   : > { %p2769_p7 = pnand %p2767_p5, %p3046_p8  ;;  %p2776_p11 = por %p2775_p10, %p2774_p4 }
  0xb7   : > { %p2770_p9 = pneg %p2769_p7 }
  0xb9   : > { %p2777_p12 = pnand %p2776_p11, %p2770_p9 }
  0xbb   : > { %2780 = shalt.err (!%p2777_p12)
}
  0xbc   : > { %2492 = dma.hbm_to_vmem [thread:$0]  (!%p3030_p6), %s3438_s13, 8192, %s495_s5, [#allocation16], %s3464_s12, %s3464_s12, %s3463_s15  }
  0xbd   : > { %s1810_s28 = sadd.s32 4294967294, %s2893_s21   ;;  %s3202_s26 = sadd.s32 1, %s2893_s21  }
  0xbe   : > { %s42_s16 = sadd.s32 1, %s2889_s20  ;;  %s39_s27 = ssub.s32 %s2893_s21, %s3202_s26 }
  0xbf   : > { %p49_p8 = scmp.ne.s32.totalorder %s2889_s20, %s2885_s19  ;;  %p40_p1 = scmp.eq.s32.totalorder %s39_s27, 0 }
  0xc0   : > { %p50_p3 = scmp.eq.s32.totalorder %s2893_s21, 0  ;;  %p55_p13 = scmp.ne.s32.totalorder %s2885_s19, %s2881_s18 }
  0xc1   : > { %p373_p0 = scmp.eq.s32.totalorder %s3014_s24, 1  ;;  %p3465_p5 = scmp.eq.s32.totalorder %s3014_s24, 0 }
  0xc2   : > { %s3214_s30 = scalar_select %p40_p1, %s2889_s20, %s42_s16  }
  0xc3   : > { %p51_p2 = por %p50_p3, %p49_p8  ;;  %p3218_p7 = por %p3465_p5, %p55_p13 }
  0xc4   : > { %p3222_p6 = por %p373_p0, %p49_p8  ;;  %p379_p9 = scmp.eq.s32.totalorder %s1810_s28, 1 }
  0xc5   : > { %p2508_p4 = scmp.lt.s32.totalorder %s2893_s21, 2  ;;  %s511_s12 = sand.u32 1, %s2889_s20  }
  0xc6   : > { %s3467_s15 = scalar_select %p3222_p6, 1, 0 }
  0xc7   : > { %p3228_p10 = por %p379_p9, %p55_p13  ;;  %s1820_s4 = sshll.u32 %s511_s12, 3 }
  0xc8   : > { %s1821_s6 = sshll.u32 %s2893_s21, 7  ;;  %s515_s22 = scalar_lea.vmem [#allocation3], %s1820_s4 }
  0xc9   : > { %s3468_s5 = scalar_select %p3228_p10, 1, 0 }
  0xca   : > { %s3236_s17 = scalar_lea.hbm %s3425_s0, %s1821_s6  ;;  %s522_s1 = sshll.u32 %s515_s22, 4  ;;  %s3242_s1 = int_to_ptr.vmem [resolvable:$true] %s522_s1 }
  0xcb   : > { %p3238_p11 = pnand %p2508_p4, %p51_p2  ;;  %s512_s14 = scalar_lea.sflag [#allocation4], %s511_s12 }
  0xcc   : > { %s2781_s28 = scalar_lea.hbm %s3236_s17, 128  ;;  %s2786_s4 = scalar_lea.hbm %s3425_s0, 256 }
  0xcd   : > { %p2782_p12 = scmp.ne.s32.totalorder %s3236_s17, %s2781_s28  ;;  %p2783_p8 = pneg %p3238_p11 }
  0xce   : > { %p2787_p13 = scmp.lt.u32.totalorder %s3236_s17, %s3425_s0  ;;  %p2788_p0 = scmp.lt.u32.totalorder %s2786_s4, %s2781_s28 }
  0xcf   : > { %p2784_p1 = pnand %p2783_p8, %p2782_p12  ;;  %p2790_p5 = scmp.lt.u32.totalorder %s2781_s28, %s3236_s17 }
  0xd0   : > { %p2789_p2 = por %p2788_p0, %p2787_p13 }
  0xd1   : > { %p2785_p3 = pneg %p2784_p1 }
  0xd2   : > { %p2791_p9 = por %p2790_p5, %p2789_p2 }
  0xd4   : > { %p2792_p4 = pnand %p2791_p9, %p2785_p3 }
  0xd6   : > { %2795 = shalt.err (!%p2792_p4)
}
  0xd7   : > { %s2796_s12 = scalar_lea.vmem %s3242_s1, 128  ;;  %s2908_s10 = smov [#allocation3]  }
  0xd8   : > { %p2797_p12 = scmp.ne.s32.totalorder %s3242_s1, %s2796_s12  ;;  %s2801_s22 = sshll.u32 %s2908_s10, 4  ;;  %s2802_s22 = int_to_ptr.vmem [resolvable:$false] %s2801_s22 }
  0xd9   : > { %s2803_s16 = scalar_lea.vmem %s2802_s22, 256  ;;  %p2804_p6 = scmp.lt.s32.totalorder %s3242_s1, %s2802_s22 }
  0xda   : > { %p2799_p1 = pnand %p2797_p12, %p2783_p8  ;;  %p2805_p13 = scmp.lt.s32.totalorder %s2803_s16, %s2796_s12 }
  0xdc   : > { %p2800_p10 = pneg %p2799_p1  ;;  %p2806_p0 = por %p2805_p13, %p2804_p6 }
  0xde   : > { %p2807_p2 = pnand %p2806_p0, %p2800_p10 }
  0xe0   : > { %2810 = shalt.err (!%p2807_p2)
}
  0xe1   : > { %2496 = dma.hbm_to_vmem [thread:$0]  (!%p3238_p11), %s3236_s17, 128, %s3242_s1, %s512_s14  }
  0xe2   : > { %p3470_p3 = scmp.ne.s32.totalorder %s3458_s25, 0 }
  0xe3   : > { %s3272_s28 = sand.u32 (!%p3470_p3), 1, %s2885_s19  }
  0xe4   : > { %531 = sbr.rel (%p3470_p3) target bundleno = 1906 (0x772), region = 80  ;;  %s1823_s27 = sshll.u32 (!%p3470_p3), %s3272_s28, 3 }
  0xe5   : > { %s534_s4 = scalar_lea.sflag (!%p3470_p3), [#allocation4], %s3272_s28  ;;  %s537_s6 = scalar_lea.vmem (!%p3470_p3), [#allocation3], %s1823_s27 }
  0xeb   : > { %2856 = dma.done.wait (%p3218_p7), %s534_s4, 128  }
  0xec   : > { %2858 = vsyncadd (%p3218_p7), %s534_s4, 4294967168  ;;  %p3471_p6 = scmp.eq.s32.totalorder %s3014_s24, 0 }
  0xee   : > { %2860 = dma.done.wait (%p3471_p6), [#allocation7], 4096   ;;  %p3472_p10 = pmov %p3471_p6 }
  0xef   : > { %p3473_p11 = pmov %p3471_p6 }
  0xf0   : > { %2862 = vsyncadd (%p3472_p10), [#allocation7], 4294963200 }
  0xf1   : > { %2864 = dma.done.wait (%p3473_p11), [#allocation10], 4096   ;;  %p3474_p8 = pmov %p3471_p6 }
  0xf2   : > { %p3475_p5 = pmov %p3471_p6 }
  0xf3   : > { %2866 = vsyncadd (%p3474_p8), [#allocation10], 4294963200 }
  0xf4   : > { %2868 = dma.done.wait (%p3475_p5), [#allocation13], 20480   ;;  %p3476_p9 = pmov %p3475_p5 }
  0xf5   : > { %p3477_p7 = pmov %p3475_p5 }
  0xf6   : > { %2870 = vsyncadd (%p3476_p9), [#allocation13], 4294946816 }
  0xf7   : > { %2872 = dma.done.wait (%p3477_p7), [#allocation16], 8192   ;;  %p3478_p4 = pmov %p3475_p5 }
  0xf8   : > { %v2909_v0 = vmov 0.0|0.0   ;;  %v2910_v1 = vmov 0.0   ;;  %vm2911_vm0 = vmmov 0   ;;  %v617_v2 = vld [vmem:[#allocation6] sm:$0xff]  ;;  %v618_v3 = vld [vmem:[#allocation6 + $0x8] sm:$0xff]  ;;  %v619_v4 = vld [vmem:[#allocation6 + $0x10] sm:$0xff] }
  0xf9   : > { %2874 = vsyncadd (%p3478_p4), [#allocation16], 4294959104  ;;  %2119 = vmatprep.subr.bf16.mxu0 %v2909_v0  ;;  %612 = vst [vmem:[#allocation2] sm:$0xff] %v2910_v1  ;;  %2011 = vmatprep.mubr.msk.f32.mxu0 %vm2911_vm0, %v2910_v1  ;;  %v2120_v5 = vpack.c.bf16 %v618_v3, %v617_v2  ;;  %v620_v6 = vld [vmem:[#allocation6 + $0x18] sm:$0xff]  ;;  %vm614_vm1 = vcmask 162816   ;;  %v621_v8 = vld [vmem:[#allocation6 + $0x20] sm:$0xff] }
  0xfa   : > { %2143 = vmatprep.subr.bf16.mxu1 %v2909_v0  ;;  %2046 = vmatprep.mubr.msk.f32.mxu1 %vm2911_vm0, %v2910_v1  ;;  %v2123_v7 = vpack.c.bf16 %v620_v6, %v619_v4  ;;  %v622_v9 = vld [vmem:[#allocation6 + $0x28] sm:$0xff]  ;;  %v613_v10 = vld [vmem:[%s537_s6] sm:$0xff]  ;;  %v715_v11 = vld [vmem:[#allocation8] sm:$0xff]  ;;  %s3479_s29 = sld [smem:[#allocation25_spill]]  ;;  %s3480_s12 = sld [smem:[#allocation27_spill]]  ;;  %vm1657_vm2 = vcmask 392192  }
  0xfb   : > { %2121 = vmatpush3.bf16.msra.mxu0 %v2120_v5  ;;  %615 = vst.msk [vmem:[#allocation2] sm:$0xff] %vm614_vm1, %v613_v10  ;;  %v716_v12 = vld [vmem:[#allocation8 + $0x8] sm:$0xff]  ;;  %v717_v13 = vld [vmem:[#allocation8 + $0x10] sm:$0xff]  ;;  %v718_v14 = vld [vmem:[#allocation8 + $0x18] sm:$0xff]  ;;  %v2126_v15 = vpack.c.bf16 %v622_v9, %v621_v8  ;;  %s3481_s16 = sld [smem:[#allocation28_spill]]  ;;  %s3482_s25 = sld [smem:[#allocation29_spill]] }
  0xfc   : > { %2122 = vmatprep.subr.bf16.mxu0 %v2909_v0  ;;  %v2144_v16 = vpack.c.bf16 %v716_v12, %v715_v11  ;;  %v623_v17 = vld [vmem:[#allocation6 + $0x30] sm:$0xff]  ;;  %v624_v18 = vld [vmem:[#allocation6 + $0x38] sm:$0xff]  ;;  %v2147_v19 = vpack.c.bf16 %v718_v14, %v717_v13  ;;  %v719_v20 = vld [vmem:[#allocation8 + $0x20] sm:$0xff]  ;;  %s3483_s1 = sld [smem:[#allocation30_spill]]  ;;  %s3484_s8 = sld [smem:[#allocation31_spill]] }
  0xfd   : > { %v720_v21 = vld [vmem:[#allocation8 + $0x28] sm:$0xff]  ;;  %v2129_v22 = vpack.c.bf16 %v624_v18, %v623_v17  ;;  %v625_v23 = vld [vmem:[#allocation6 + $0x40] sm:$0xff]  ;;  %v627_v27 = vld [vmem:[#allocation6 + $0x50] sm:$0xff]  ;;  %s611_s10 = scalar_lea.vmem [#allocation17], %s1823_s27  ;;  %s3485_s6 = sld [smem:[#allocation32_spill]] }
  0xfe   : > { %2145 = vmatpush3.bf16.msra.mxu1 %v2144_v16  ;;  %v626_v24 = vld [vmem:[#allocation6 + $0x48] sm:$0xff]  ;;  %v2150_v25 = vpack.c.bf16 %v720_v21, %v719_v20  ;;  %v628_v28 = vld [vmem:[#allocation6 + $0x58] sm:$0xff]  ;;  %v629_v30 = vld [vmem:[#allocation6 + $0x60] sm:$0xff]  ;;  %s1673_s22 = sshll.u32 %s611_s10, 4  ;;  %s1660_s23 = scalar_lea.sflag [#allocation5], %s3272_s28  ;;  %s3383_s22 = int_to_ptr.vmem [resolvable:$true] %s1673_s22 }
  0xff   : > { %2124 = vmatpush3.bf16.msra.mxu0 %v2123_v7  ;;  %2146 = vmatprep.subr.bf16.mxu1 %v2909_v0  ;;  %v2132_v26 = vpack.c.bf16 %v626_v24, %v625_v23  ;;  %v2135_v29 = vpack.c.bf16 %v628_v28, %v627_v27  ;;  %v630_v31 = vld [vmem:[#allocation6 + $0x68] sm:$0xff]  ;;  %v631_v33 = vld [vmem:[#allocation6 + $0x70] sm:$0xff]  ;;  %v632_v34 = vld [vmem:[#allocation6 + $0x78] sm:$0xff]  ;;  %s2811_s17 = scalar_lea.vmem %s3383_s22, 128  ;;  %p3486_p1 = scmp.ne.s32.totalorder %s3467_s15, 0 }
 0x100   : > { %2125 = vmatprep.subr.bf16.mxu0 %v2909_v0  ;;  %v2138_v32 = vpack.c.bf16 %v630_v31, %v629_v30  ;;  %v2141_v35 = vpack.c.bf16 %v632_v34, %v631_v33  ;;  %v721_v37 = vld [vmem:[#allocation8 + $0x30] sm:$0xff]  ;;  %v722_v38 = vld [vmem:[#allocation8 + $0x38] sm:$0xff]  ;;  %v723_v40 = vld [vmem:[#allocation8 + $0x40] sm:$0xff]  ;;  %p2812_p12 = scmp.ne.s32.totalorder %s3383_s22, %s2811_s17 }
 0x101   : > { %v2153_v39 = vpack.c.bf16 %v722_v38, %v721_v37  ;;  %v724_v41 = vld [vmem:[#allocation8 + $0x48] sm:$0xff]  ;;  %v725_v43 = vld [vmem:[#allocation8 + $0x50] sm:$0xff]  ;;  %v726_v44 = vld [vmem:[#allocation8 + $0x58] sm:$0xff] }
 0x102   : > { %2148 = vmatpush3.bf16.msra.mxu1 %v2147_v19  ;;  %v616_v36 = vld [vmem:[#allocation2] sm:$0xff]  ;;  %v2156_v42 = vpack.c.bf16 %v724_v41, %v723_v40  ;;  %v2159_v45 = vpack.c.bf16 %v726_v44, %v725_v43  ;;  %v727_v46 = vld [vmem:[#allocation8 + $0x60] sm:$0xff]  ;;  %v729_v49 = vld [vmem:[#allocation8 + $0x70] sm:$0xff]  ;;  %p2813_p13 = pnand %p2812_p12, %p3486_p1 }
 0x103   : > { %2127 = vmatpush3.bf16.msra.mxu0 %v2126_v15  ;;  %2149 = vmatprep.subr.bf16.mxu1 %v2909_v0  ;;  %v728_v47 = vld [vmem:[#allocation8 + $0x68] sm:$0xff]  ;;  %v730_v50 = vld [vmem:[#allocation8 + $0x78] sm:$0xff]  ;;  %v813_v52 = vld [vmem:[#allocation9] sm:$0xff] }
 0x104   : > { %2128 = vmatprep.subr.bf16.mxu0 %v2909_v0  ;;  %v2162_v48 = vpack.c.bf16 %v728_v47, %v727_v46  ;;  %v2165_v51 = vpack.c.bf16 %v730_v50, %v729_v49  ;;  %v814_v53 = vld [vmem:[#allocation9 + $0x8] sm:$0xff]  ;;  %v815_v54 = vld [vmem:[#allocation9 + $0x10] sm:$0xff]  ;;  %v816_v56 = vld [vmem:[#allocation9 + $0x18] sm:$0xff]  ;;  %p2814_p0 = pneg %p2813_p13 }
 0x105   : > { %v2168_v55 = vpack.c.bf16 %v814_v53, %v813_v52  ;;  %v2171_v57 = vpack.c.bf16 %v816_v56, %v815_v54  ;;  %v817_v58 = vld [vmem:[#allocation9 + $0x20] sm:$0xff]  ;;  %v818_v59 = vld [vmem:[#allocation9 + $0x28] sm:$0xff]  ;;  %v819_v8 = vld [vmem:[#allocation9 + $0x30] sm:$0xff] }
 0x106   : > { %2151 = vmatpush3.bf16.msra.mxu1 %v2150_v25  ;;  %v2174_v60 = vpack.c.bf16 %v818_v59, %v817_v58  ;;  %v1832_v61 = vld [vmem:[%s3427_s2] ss:$0 sm:$0xff]  ;;  %v820_v9 = vld [vmem:[#allocation9 + $0x38] sm:$0xff]  ;;  %v821_v11 = vld [vmem:[#allocation9 + $0x40] sm:$0xff] }
 0x107   : > { %2130 = vmatpush3.bf16.msra.mxu0 %v2129_v22  ;;  %2152 = vmatprep.subr.bf16.mxu1 %v2909_v0  ;;  %v2177_v10 = vpack.c.bf16 %v820_v9, %v819_v8  ;;  %v822_v12 = vld [vmem:[#allocation9 + $0x48] sm:$0xff]  ;;  %v823_v14 = vld [vmem:[#allocation9 + $0x50] sm:$0xff]  ;;  %v824_v15 = vld [vmem:[#allocation9 + $0x58] sm:$0xff] }
 0x108   : > { %2131 = vmatprep.subr.bf16.mxu0 %v2909_v0  ;;  %v2180_v13 = vpack.c.bf16 %v822_v12, %v821_v11  ;;  %v2183_v16 = vpack.c.bf16 %v824_v15, %v823_v14  ;;  %v825_v17 = vld [vmem:[#allocation9 + $0x60] sm:$0xff]  ;;  %v826_v18 = vld [vmem:[#allocation9 + $0x68] sm:$0xff]  ;;  %v827_v20 = vld [vmem:[#allocation9 + $0x70] sm:$0xff] }
 0x109   : > { %v2186_v19 = vpack.c.bf16 %v826_v18, %v825_v17  ;;  %v828_v21 = vld [vmem:[#allocation9 + $0x78] sm:$0xff]  ;;  %v911_v23 = vld [vmem:[#allocation11] sm:$0xff]  ;;  %v912_v24 = vld [vmem:[#allocation11 + $0x8] sm:$0xff] }
 0x10a   : > { %2154 = vmatpush3.bf16.msra.mxu1 %v2153_v39  ;;  %v2189_v22 = vpack.c.bf16 %v828_v21, %v827_v20  ;;  %v913_v25 = vld [vmem:[#allocation11 + $0x10] sm:$0xff]  ;;  %v914_v27 = vld [vmem:[#allocation11 + $0x18] sm:$0xff]  ;;  %v916_v30 = vld [vmem:[#allocation11 + $0x28] sm:$0xff] }
 0x10b   : > { %2133 = vmatpush3.bf16.msra.mxu0 %v2132_v26  ;;  %2155 = vmatprep.subr.bf16.mxu1 %v2909_v0  ;;  %v2192_v26 = vpack.c.bf16 %v912_v24, %v911_v23  ;;  %v2195_v28 = vpack.c.bf16 %v914_v27, %v913_v25  ;;  %v917_v41 = vld [vmem:[#allocation11 + $0x30] sm:$0xff]  ;;  %v919_v44 = vld [vmem:[#allocation11 + $0x40] sm:$0xff]  ;;  %v926_v53 = vld [vmem:[#allocation11 + $0x78] sm:$0xff] }
 0x10c   : > { %2134 = vmatprep.subr.bf16.mxu0 %v2909_v0  ;;  %v921_v47 = vld [vmem:[#allocation11 + $0x50] sm:$0xff]  ;;  %v923_v50 = vld [vmem:[#allocation11 + $0x60] sm:$0xff]  ;;  %v1012_v56 = vld [vmem:[#allocation12 + $0x18] sm:$0xff] }
 0x10d   : > { %v925_v52 = vld [vmem:[#allocation11 + $0x70] sm:$0xff]  ;;  %v1024_v20 = vld [vmem:[#allocation12 + $0x78] sm:$0xff]  ;;  %v1026_v25 = vld [vmem:[#allocation12 + $0x88] sm:$0xff] }
 0x10e   : > { %2157 = vmatpush3.bf16.msra.mxu1 %v2156_v42  ;;  %v918_v42 = vld [vmem:[#allocation11 + $0x38] sm:$0xff]  ;;  %v2213_v54 = vpack.c.bf16 %v926_v53, %v925_v52  ;;  %v1011_v59 = vld [vmem:[#allocation12 + $0x10] sm:$0xff]  ;;  %v1134_v53 = vld [vmem:[#allocation14] sm:$0xff] }
 0x10f   : > { %2136 = vmatpush3.bf16.msra.mxu0 %v2135_v29  ;;  %2158 = vmatprep.subr.bf16.mxu1 %v2909_v0  ;;  %v915_v29 = vld [vmem:[#allocation11 + $0x20] sm:$0xff]  ;;  %v2201_v43 = vpack.c.bf16 %v918_v42, %v917_v41  ;;  %v1019_v8 = vld [vmem:[#allocation12 + $0x50] sm:$0xff]  ;;  %v1141_v52 = vld [vmem:[#allocation14 + $0x38] sm:$0xff] }
 0x110   : > { %2137 = vmatprep.subr.bf16.mxu0 %v2909_v0  ;;  %v2198_v31 = vpack.c.bf16 %v916_v30, %v915_v29  ;;  %v1023_v23 = vld [vmem:[#allocation12 + $0x70] sm:$0xff] }
 0x111   : > { %v1027_v29 = vld [vmem:[#allocation12 + $0x90] sm:$0xff] }
 0x112   : > { %2160 = vmatpush3.bf16.msra.mxu1 %v2159_v45  ;;  %v920_v45 = vld [vmem:[#allocation11 + $0x48] sm:$0xff]  ;;  %v1035_v41 = vld [vmem:[#allocation12 + $0xd0] sm:$0xff] }
 0x113   : > { %2139 = vmatpush3.bf16.msra.mxu0 %v2138_v32  ;;  %2161 = vmatprep.subr.bf16.mxu1 %v2909_v0  ;;  %v1833_v32 = vld [vmem:[%s3479_s29] ss:$0 sm:$0xff]  ;;  %v2204_v46 = vpack.c.bf16 %v920_v45, %v919_v44  ;;  %v1040_v44 = vld [vmem:[#allocation12 + $0xf8] sm:$0xff] }
 0x114   : > { %2140 = vmatprep.subr.bf16.mxu0 %v2909_v0 }
 0x116   : > { %2163 = vmatpush3.bf16.msra.mxu1 %v2162_v48  ;;  %v922_v48 = vld [vmem:[#allocation11 + $0x58] sm:$0xff] }
 0x117   : > { %2142 = vmatpush3.bf16.msra.mxu0 %v2141_v35  ;;  %2164 = vmatprep.subr.bf16.mxu1 %v2909_v0  ;;  %v2207_v49 = vpack.c.bf16 %v922_v48, %v921_v47  ;;  %v1039_v47 = vld [vmem:[#allocation12 + $0xf0] sm:$0xff] }
 0x118   : > { %2167 = vmatprep.subr.bf16.mxu0 %v2909_v0 }
 0x11a   : > { %2012 = vmatmul.mubr.f32.vlgmr.msra.gmra.mrb[0].mxu0 %v616_v36  ;;  %2166 = vmatpush3.bf16.msra.mxu1 %v2165_v51 }
 0x11b   : > { %2081 = vmatprep.mubr.msk.f32.mxu0 %vm2911_vm0, %v2910_v1  ;;  %2191 = vmatprep.subr.bf16.mxu1 %v2909_v0 }
 0x11c   : > { %2169 = vmatpush3.bf16.msra.mxu0 %v2168_v55  ;;  %v1010_v55 = vld [vmem:[#allocation12 + $0x8] sm:$0xff] }
 0x11d   : > { %2170 = vmatprep.subr.bf16.mxu0 %v2909_v0  ;;  %v2215_v58 = vpack.c.bf16 %v1012_v56, %v1010_v55 }
 0x120   : > { %2172 = vmatpush3.bf16.msra.mxu0 %v2171_v57  ;;  %v1009_v57 = vld [vmem:[#allocation12] sm:$0xff] }
 0x121   : > { %2173 = vmatprep.subr.bf16.mxu0 %v2909_v0 }
 0x124   : > { %2175 = vmatpush3.bf16.msra.mxu0 %v2174_v60  ;;  %v1014_v60 = vld [vmem:[#allocation12 + $0x28] sm:$0xff] }
 0x125   : > { %2176 = vmatprep.subr.bf16.mxu0 %v2909_v0 }
 0x128   : > { %2178 = vmatpush3.bf16.msra.mxu0 %v2177_v10  ;;  %v1834_v10 = vld [vmem:[%s3480_s12] ss:$0 sm:$0xff]  ;;  %s1838_s12 = sshll.u32 %s3014_s24, 7  ;;  %s2912_s24 = smov [#allocation17]  }
 0x129   : > { %2179 = vmatprep.subr.bf16.mxu0 %v2909_v0  ;;  %s2815_s27 = sshll.u32 %s2912_s24, 4  ;;  %s2816_s27 = int_to_ptr.vmem [resolvable:$false] %s2815_s27 }
 0x12a   : > { %p2818_p2 = scmp.lt.s32.totalorder %s3383_s22, %s2816_s27 }
 0x12c   : > { %2181 = vmatpush3.bf16.msra.mxu0 %v2180_v13 }
 0x12d   : > { %2182 = vmatprep.subr.bf16.mxu0 %v2909_v0 }
 0x130   : > { %2184 = vmatpush3.bf16.msra.mxu0 %v2183_v16 }
 0x131   : > { %2185 = vmatprep.subr.bf16.mxu0 %v2909_v0 }
 0x134   : > { %2187 = vmatpush3.bf16.msra.mxu0 %v2186_v19  ;;  %v1022_v19 = vld [vmem:[#allocation12 + $0x68] sm:$0xff] }
 0x135   : > { %2188 = vmatprep.subr.bf16.mxu0 %v2909_v0  ;;  %v2227_v21 = vpack.c.bf16 %v1024_v20, %v1022_v19  ;;  %v1179_v19 = vld [vmem:[#allocation14 + $0x168] sm:$0xff] }
 0x138   : > { %2190 = vmatpush3.bf16.msra.mxu0 %v2189_v22  ;;  %v1021_v22 = vld [vmem:[#allocation12 + $0x60] sm:$0xff] }
 0x139   : > { %2216 = vmatprep.subr.bf16.mxu0 %v2215_v58  ;;  %v2229_v24 = vpack.c.bf16 %v1023_v23, %v1021_v22  ;;  %v1147_v58 = vld [vmem:[#allocation14 + $0x68] sm:$0xff]  ;;  %v1178_v22 = vld [vmem:[#allocation14 + $0x160] sm:$0xff] }
 0x1ed   : > { %v706_v62 = vpop.f32.mrb[0].mxu0 }
 0x1ee   : > { %v707_v63 = vadd.f32 %v1832_v61, %v706_v62  ;;  %v2013_v2 = vpop.f32.mrb[1].mxu0  ;;  %v1016_v61 = vld [vmem:[#allocation12 + $0x38] sm:$0xff]  ;;  %v2217_v62 = vpack.c.bf16 %v1011_v59, %v1009_v57  ;;  %v1143_v57 = vld [vmem:[#allocation14 + $0x48] sm:$0xff] }
 0x1ef   : > { %v1013_v2 = vld [vmem:[#allocation12 + $0x20] sm:$0xff]  ;;  %v2251_v59 = vpack.c.bf16 %v1147_v58, %v1143_v57  ;;  %v1136_v58 = vld [vmem:[#allocation14 + $0x10] sm:$0xff] }
 0x1f0   : > { %v711_v3 = vmul.f32 0.70710677, %v707_v63  ;;  %v710_v5 = vmul.f32 0.5, %v707_v63  ;;  %v2219_v63 = vpack.c.bf16 %v1016_v61, %v1014_v60  ;;  %v1142_v60 = vld [vmem:[#allocation14 + $0x40] sm:$0xff] }
 0x1f1   : > { %v1146_v61 = vld [vmem:[#allocation14 + $0x60] sm:$0xff] }
 0x1f2   : > { %2565 = verf.f32 %v711_v3  ;;  %v1015_v3 = vld [vmem:[#allocation12 + $0x30] sm:$0xff] }
 0x1fc   : > { %v2566_v4 = vpop.eup %2565 }
 0x1fd   : > { %v713_v6 = vadd.f32 1.0, %v2566_v4  ;;  %v1018_v4 = vld [vmem:[#allocation12 + $0x48] sm:$0xff] }
 0x1ff   : > { %v714_v7 = vmul.f32 %v713_v6, %v710_v5  ;;  %v1020_v5 = vld [vmem:[#allocation12 + $0x58] sm:$0xff] }
 0x200   : > { %v2223_v6 = vpack.c.bf16 %v1020_v5, %v1018_v4  ;;  %v1150_v4 = vld [vmem:[#allocation14 + $0x80] sm:$0xff] }
 0x201   : > { %2047 = vmatmul.mubr.f32.vlgmr.msra.gmra.mrb[0].mxu1 %v714_v7  ;;  %v1017_v7 = vld [vmem:[#allocation12 + $0x40] sm:$0xff] }
 0x202   : > { %2116 = vmatprep.mubr.msk.f32.mxu1 %vm2911_vm0, %v2910_v1  ;;  %2193 = vmatpush3.bf16.msra.mxu1 %v2192_v26  ;;  %v2225_v9 = vpack.c.bf16 %v1019_v8, %v1017_v7  ;;  %v1028_v26 = vld [vmem:[#allocation12 + $0x98] sm:$0xff]  ;;  %v1154_v5 = vld [vmem:[#allocation14 + $0xa0] sm:$0xff]  ;;  %v1163_v7 = vld [vmem:[#allocation14 + $0xe8] sm:$0xff] }
 0x203   : > { %2194 = vmatprep.subr.bf16.mxu1 %v2909_v0  ;;  %v2231_v27 = vpack.c.bf16 %v1028_v26, %v1026_v25  ;;  %v1187_v25 = vld [vmem:[#allocation14 + $0x1a8] sm:$0xff] }
 0x206   : > { %2196 = vmatpush3.bf16.msra.mxu1 %v2195_v28  ;;  %v1025_v28 = vld [vmem:[#allocation12 + $0x80] sm:$0xff] }
 0x207   : > { %2197 = vmatprep.subr.bf16.mxu1 %v2909_v0  ;;  %v2233_v30 = vpack.c.bf16 %v1027_v29, %v1025_v28  ;;  %v1186_v28 = vld [vmem:[#allocation14 + $0x1a0] sm:$0xff] }
 0x20a   : > { %2199 = vmatpush3.bf16.msra.mxu1 %v2198_v31  ;;  %v1030_v31 = vld [vmem:[#allocation12 + $0xa8] sm:$0xff] }
 0x20b   : > { %2200 = vmatprep.subr.bf16.mxu1 %v2909_v0 }
 0x20e   : > { %2202 = vmatpush3.bf16.msra.mxu1 %v2201_v43  ;;  %v1038_v43 = vld [vmem:[#allocation12 + $0xe8] sm:$0xff] }
 0x20f   : > { %2203 = vmatprep.subr.bf16.mxu1 %v2909_v0  ;;  %v2243_v45 = vpack.c.bf16 %v1040_v44, %v1038_v43  ;;  %v1211_v43 = vld [vmem:[#allocation14 + $0x268] sm:$0xff] }
 0x212   : > { %2205 = vmatpush3.bf16.msra.mxu1 %v2204_v46  ;;  %v1037_v46 = vld [vmem:[#allocation12 + $0xe0] sm:$0xff] }
 0x213   : > { %2206 = vmatprep.subr.bf16.mxu1 %v2909_v0  ;;  %v2245_v48 = vpack.c.bf16 %v1039_v47, %v1037_v46  ;;  %v1210_v46 = vld [vmem:[#allocation14 + $0x260] sm:$0xff] }
 0x216   : > { %2208 = vmatpush3.bf16.msra.mxu1 %v2207_v49  ;;  %v1135_v49 = vld [vmem:[#allocation14 + $0x8] sm:$0xff] }
 0x217   : > { %2209 = vmatprep.subr.bf16.mxu1 %v2909_v0 }
 0x2d4   : > { %v804_v33 = vpop.f32.mrb[0].mxu1 }
 0x2d5   : > { %v805_v34 = vadd.f32 %v1833_v32, %v804_v33  ;;  %v2048_v35 = vpop.f32.mrb[1].mxu1  ;;  %v1032_v32 = vld [vmem:[#allocation12 + $0xb8] sm:$0xff] }
 0x2d6   : > { %v2235_v33 = vpack.c.bf16 %v1032_v32, %v1030_v31  ;;  %v1031_v35 = vld [vmem:[#allocation12 + $0xb0] sm:$0xff]  ;;  %v1195_v31 = vld [vmem:[#allocation14 + $0x1e8] sm:$0xff] }
 0x2d7   : > { %v809_v36 = vmul.f32 0.70710677, %v805_v34  ;;  %v808_v38 = vmul.f32 0.5, %v805_v34  ;;  %v1029_v34 = vld [vmem:[#allocation12 + $0xa0] sm:$0xff] }
 0x2d9   : > { %2567 = verf.f32 %v809_v36  ;;  %v2237_v36 = vpack.c.bf16 %v1031_v35, %v1029_v34  ;;  %v1194_v34 = vld [vmem:[#allocation14 + $0x1e0] sm:$0xff] }
 0x2e3   : > { %v2568_v37 = vpop.eup %2567 }
 0x2e4   : > { %v811_v39 = vadd.f32 1.0, %v2568_v37  ;;  %v1034_v37 = vld [vmem:[#allocation12 + $0xc8] sm:$0xff] }
 0x2e6   : > { %v812_v40 = vmul.f32 %v811_v39, %v808_v38  ;;  %v1036_v38 = vld [vmem:[#allocation12 + $0xd8] sm:$0xff] }
 0x2e7   : > { %v2239_v39 = vpack.c.bf16 %v1036_v38, %v1034_v37  ;;  %v1203_v37 = vld [vmem:[#allocation14 + $0x228] sm:$0xff] }
 0x2e8   : > { %2082 = vmatmul.mubr.f32.vlgmr.msra.gmra.mrb[2].mxu0 %v812_v40  ;;  %v1033_v40 = vld [vmem:[#allocation12 + $0xc0] sm:$0xff] }
 0x2e9   : > { %1117 = vmatprep.mubr.f32.mxu0 %v2910_v1  ;;  %v924_v1 = vld [vmem:[#allocation11 + $0x68] sm:$0xff]  ;;  %2218 = vmatpush1.bf16.msra.mxu0 %v2217_v62  ;;  %v2241_v42 = vpack.c.bf16 %v1035_v41, %v1033_v40  ;;  %v2253_v62 = vpack.c.bf16 %v1146_v61, %v1142_v60  ;;  %v1202_v40 = vld [vmem:[#allocation14 + $0x220] sm:$0xff]  ;;  %v1145_v61 = vld [vmem:[#allocation14 + $0x58] sm:$0xff] }
 0x2ea   : > { %v2210_v51 = vpack.c.bf16 %v924_v1, %v923_v50  ;;  %2220 = vmatprep.subr.bf16.mxu0 %v2219_v63  ;;  %v1139_v50 = vld [vmem:[#allocation14 + $0x28] sm:$0xff]  ;;  %v1137_v1 = vld [vmem:[#allocation14 + $0x18] sm:$0xff] }
 0x2eb   : > { %v2311_v55 = vpack.c.bf16 %v1141_v52, %v1137_v1  ;;  %v1151_v63 = vld [vmem:[#allocation14 + $0x88] sm:$0xff]  ;;  %v1214_v1 = vld [vmem:[#allocation14 + $0x280] sm:$0xff] }
 0x2ec   : > { %2211 = vmatpush3.bf16.msra.mxu1 %v2210_v51  ;;  %v2247_v51 = vpack.c.bf16 %v1139_v50, %v1135_v49  ;;  %v1219_v49 = vld [vmem:[#allocation14 + $0x2a8] sm:$0xff] }
 0x2ed   : > { %2212 = vmatprep.subr.bf16.mxu1 %v2909_v0  ;;  %v2221_v0 = vpack.c.bf16 %v1015_v3, %v1013_v2  ;;  %v1155_v2 = vld [vmem:[#allocation14 + $0xa8] sm:$0xff] }
 0x2ee   : > { %v2255_v3 = vpack.c.bf16 %v1155_v2, %v1151_v63 }
 0x2ef   : > { %2222 = vmatpush1.bf16.msra.mxu0 %v2221_v0  ;;  %v2257_v0 = vpack.c.bf16 %v1154_v5, %v1150_v4 }
 0x2f0   : > { %2214 = vmatpush3.bf16.msra.mxu1 %v2213_v54  ;;  %2224 = vmatprep.subr.bf16.mxu0 %v2223_v6  ;;  %v1138_v54 = vld [vmem:[#allocation14 + $0x20] sm:$0xff]  ;;  %v1159_v6 = vld [vmem:[#allocation14 + $0xc8] sm:$0xff] }
 0x2f1   : > { %v2249_v56 = vpack.c.bf16 %v1138_v54, %v1134_v53  ;;  %2248 = vmatprep.subr.bf16.mxu1 %v2247_v51  ;;  %v2259_v8 = vpack.c.bf16 %v1163_v7, %v1159_v6  ;;  %v1218_v51 = vld [vmem:[#allocation14 + $0x2a0] sm:$0xff]  ;;  %v1835_v53 = vld [vmem:[%s3481_s16] ss:$0 sm:$0xff]  ;;  %v1148_v6 = vld [vmem:[#allocation14 + $0x70] sm:$0xff] }
 0x2f2   : > { %v2289_v52 = vpack.c.bf16 %v1218_v51, %v1214_v1  ;;  %v1153_v7 = vld [vmem:[#allocation14 + $0x98] sm:$0xff] }
 0x2f3   : > { %2226 = vmatpush1.bf16.msra.mxu0 %v2225_v9  ;;  %v1158_v9 = vld [vmem:[#allocation14 + $0xc0] sm:$0xff] }
 0x2f4   : > { %2228 = vmatprep.subr.bf16.mxu0 %v2227_v21  ;;  %v1174_v21 = vld [vmem:[#allocation14 + $0x140] sm:$0xff] }
 0x2f5   : > { %v2269_v23 = vpack.c.bf16 %v1178_v22, %v1174_v21 }
 0x2f7   : > { %2230 = vmatpush1.bf16.msra.mxu0 %v2229_v24  ;;  %v1183_v24 = vld [vmem:[#allocation14 + $0x188] sm:$0xff] }
 0x2f8   : > { %2232 = vmatprep.subr.bf16.mxu0 %v2231_v27  ;;  %v2271_v26 = vpack.c.bf16 %v1187_v25, %v1183_v24  ;;  %v1182_v27 = vld [vmem:[#allocation14 + $0x180] sm:$0xff]  ;;  %v1172_v24 = vld [vmem:[#allocation14 + $0x130] sm:$0xff]  ;;  %v1177_v25 = vld [vmem:[#allocation14 + $0x158] sm:$0xff] }
 0x2f9   : > { %v2273_v29 = vpack.c.bf16 %v1186_v28, %v1182_v27 }
 0x2fb   : > { %2234 = vmatpush1.bf16.msra.mxu0 %v2233_v30  ;;  %v1191_v30 = vld [vmem:[#allocation14 + $0x1c8] sm:$0xff] }
 0x2fc   : > { %2236 = vmatprep.subr.bf16.mxu0 %v2235_v33  ;;  %v2275_v32 = vpack.c.bf16 %v1195_v31, %v1191_v30  ;;  %v1190_v33 = vld [vmem:[#allocation14 + $0x1c0] sm:$0xff]  ;;  %v1180_v30 = vld [vmem:[#allocation14 + $0x170] sm:$0xff]  ;;  %v1185_v31 = vld [vmem:[#allocation14 + $0x198] sm:$0xff] }
 0x2fd   : > { %v2277_v35 = vpack.c.bf16 %v1194_v34, %v1190_v33 }
 0x2ff   : > { %2238 = vmatpush1.bf16.msra.mxu0 %v2237_v36  ;;  %v1199_v36 = vld [vmem:[#allocation14 + $0x208] sm:$0xff] }
 0x300   : > { %2240 = vmatprep.subr.bf16.mxu0 %v2239_v39  ;;  %v2279_v38 = vpack.c.bf16 %v1203_v37, %v1199_v36  ;;  %v1198_v39 = vld [vmem:[#allocation14 + $0x200] sm:$0xff]  ;;  %v1188_v36 = vld [vmem:[#allocation14 + $0x1b0] sm:$0xff]  ;;  %v1193_v37 = vld [vmem:[#allocation14 + $0x1d8] sm:$0xff] }
 0x301   : > { %v2281_v41 = vpack.c.bf16 %v1202_v40, %v1198_v39 }
 0x303   : > { %2242 = vmatpush1.bf16.msra.mxu0 %v2241_v42  ;;  %v1207_v42 = vld [vmem:[#allocation14 + $0x248] sm:$0xff] }
 0x304   : > { %2244 = vmatprep.subr.bf16.mxu0 %v2243_v45  ;;  %v2283_v44 = vpack.c.bf16 %v1211_v43, %v1207_v42  ;;  %v1206_v45 = vld [vmem:[#allocation14 + $0x240] sm:$0xff]  ;;  %v1196_v42 = vld [vmem:[#allocation14 + $0x1f0] sm:$0xff]  ;;  %v1201_v43 = vld [vmem:[#allocation14 + $0x218] sm:$0xff] }
 0x305   : > { %v2285_v47 = vpack.c.bf16 %v1210_v46, %v1206_v45 }
 0x307   : > { %2246 = vmatpush1.bf16.msra.mxu0 %v2245_v48  ;;  %v1215_v48 = vld [vmem:[#allocation14 + $0x288] sm:$0xff] }
 0x308   : > { %2312 = vmatprep.subr.bf16.mxu0 %v2311_v55  ;;  %v2287_v50 = vpack.c.bf16 %v1219_v49, %v1215_v48  ;;  %v1204_v48 = vld [vmem:[#allocation14 + $0x230] sm:$0xff]  ;;  %v1209_v49 = vld [vmem:[#allocation14 + $0x258] sm:$0xff] }
 0x3bb   : > { %v902_v11 = vpop.f32.mrb[2].mxu0 }
 0x3bc   : > { %v903_v12 = vadd.f32 %v1834_v10, %v902_v11  ;;  %v2083_v13 = vpop.f32.mrb[3].mxu0  ;;  %v1162_v10 = vld [vmem:[#allocation14 + $0xe0] sm:$0xff] }
 0x3bd   : > { %v2261_v11 = vpack.c.bf16 %v1162_v10, %v1158_v9  ;;  %v1171_v13 = vld [vmem:[#allocation14 + $0x128] sm:$0xff] }
 0x3be   : > { %v907_v14 = vmul.f32 0.70710677, %v903_v12  ;;  %v906_v16 = vmul.f32 0.5, %v903_v12  ;;  %v1167_v12 = vld [vmem:[#allocation14 + $0x108] sm:$0xff] }
 0x3c0   : > { %2569 = verf.f32 %v907_v14  ;;  %v2263_v14 = vpack.c.bf16 %v1171_v13, %v1167_v12  ;;  %v1156_v12 = vld [vmem:[#allocation14 + $0xb0] sm:$0xff]  ;;  %v1161_v13 = vld [vmem:[#allocation14 + $0xd8] sm:$0xff] }
 0x3ca   : > { %v2570_v15 = vpop.eup %2569 }
 0x3cb   : > { %v909_v17 = vadd.f32 1.0, %v2570_v15  ;;  %v1166_v15 = vld [vmem:[#allocation14 + $0x100] sm:$0xff] }
 0x3cd   : > { %v910_v18 = vmul.f32 %v909_v17, %v906_v16  ;;  %v1170_v16 = vld [vmem:[#allocation14 + $0x120] sm:$0xff] }
 0x3ce   : > { %v2265_v17 = vpack.c.bf16 %v1170_v16, %v1166_v15 }
 0x3cf   : > { %2117 = vmatmul.mubr.f32.vlgmr.msra.gmra.mrb[2].mxu1 %v910_v18  ;;  %v1175_v18 = vld [vmem:[#allocation14 + $0x148] sm:$0xff] }
 0x3d0   : > { %2250 = vmatpush1.bf16.msra.mxu1 %v2249_v56  ;;  %v2267_v20 = vpack.c.bf16 %v1179_v19, %v1175_v18  ;;  %v1164_v18 = vld [vmem:[#allocation14 + $0xf0] sm:$0xff]  ;;  %v1169_v19 = vld [vmem:[#allocation14 + $0x118] sm:$0xff] }
 0x3d1   : > { %2252 = vmatprep.subr.bf16.mxu1 %v2251_v59  ;;  %v1140_v59 = vld [vmem:[#allocation14 + $0x30] sm:$0xff] }
 0x3d4   : > { %2254 = vmatpush1.bf16.msra.mxu1 %v2253_v62  ;;  %v1149_v62 = vld [vmem:[#allocation14 + $0x78] sm:$0xff] }
 0x3d5   : > { %2256 = vmatprep.subr.bf16.mxu1 %v2255_v3  ;;  %v2313_v3 = vpack.c.bf16 %v1140_v59, %v1136_v58  ;;  %v2315_v5 = vpack.c.bf16 %v1149_v62, %v1145_v61  ;;  %v1216_v58 = vld [vmem:[#allocation14 + $0x290] sm:$0xff]  ;;  %v1223_v61 = vld [vmem:[#allocation14 + $0x2c8] sm:$0xff] }
 0x3d6   : > { %v1220_v59 = vld [vmem:[#allocation14 + $0x2b0] sm:$0xff]  ;;  %v1227_v62 = vld [vmem:[#allocation14 + $0x2e8] sm:$0xff] }
 0x3d8   : > { %2258 = vmatpush1.bf16.msra.mxu1 %v2257_v0  ;;  %v1144_v0 = vld [vmem:[#allocation14 + $0x50] sm:$0xff] }
 0x3d9   : > { %2260 = vmatprep.subr.bf16.mxu1 %v2259_v8  ;;  %v1157_v8 = vld [vmem:[#allocation14 + $0xb8] sm:$0xff]  ;;  %v2317_v9 = vpack.c.bf16 %v1148_v6, %v1144_v0 }
 0x3da   : > { %v2319_v10 = vpack.c.bf16 %v1157_v8, %v1153_v7  ;;  %v1224_v7 = vld [vmem:[#allocation14 + $0x2d0] sm:$0xff] }
 0x3db   : > { %v1228_v8 = vld [vmem:[#allocation14 + $0x2f0] sm:$0xff] }
 0x3dc   : > { %2262 = vmatpush1.bf16.msra.mxu1 %v2261_v11  ;;  %v1152_v11 = vld [vmem:[#allocation14 + $0x90] sm:$0xff] }
 0x3dd   : > { %2264 = vmatprep.subr.bf16.mxu1 %v2263_v14  ;;  %v1165_v14 = vld [vmem:[#allocation14 + $0xf8] sm:$0xff]  ;;  %v2321_v15 = vpack.c.bf16 %v1156_v12, %v1152_v11  ;;  %v1235_v11 = vld [vmem:[#allocation14 + $0x328] sm:$0xff] }
 0x3de   : > { %v2323_v16 = vpack.c.bf16 %v1165_v14, %v1161_v13  ;;  %v1233_v12 = vld [vmem:[#allocation14 + $0x318] sm:$0xff] }
 0x3df   : > { %v1237_v14 = vld [vmem:[#allocation14 + $0x338] sm:$0xff] }
 0x3e0   : > { %2266 = vmatpush1.bf16.msra.mxu1 %v2265_v17  ;;  %v1160_v17 = vld [vmem:[#allocation14 + $0xd0] sm:$0xff] }
 0x3e1   : > { %2268 = vmatprep.subr.bf16.mxu1 %v2267_v20  ;;  %v1173_v20 = vld [vmem:[#allocation14 + $0x138] sm:$0xff]  ;;  %v2325_v21 = vpack.c.bf16 %v1164_v18, %v1160_v17  ;;  %v2359_v17 = vpack.c.bf16 %v1237_v14, %v1233_v12  ;;  %v1446_v14 = vld [vmem:[#allocation15] sm:$0xff] }
 0x3e2   : > { %v2327_v22 = vpack.c.bf16 %v1173_v20, %v1169_v19  ;;  %v1232_v19 = vld [vmem:[#allocation14 + $0x310] sm:$0xff] }
 0x3e3   : > { %v1236_v20 = vld [vmem:[#allocation14 + $0x330] sm:$0xff] }
 0x3e4   : > { %2270 = vmatpush1.bf16.msra.mxu1 %v2269_v23  ;;  %v1168_v23 = vld [vmem:[#allocation14 + $0x110] sm:$0xff] }
 0x3e5   : > { %2272 = vmatprep.subr.bf16.mxu1 %v2271_v26  ;;  %v1181_v26 = vld [vmem:[#allocation14 + $0x178] sm:$0xff]  ;;  %v2329_v27 = vpack.c.bf16 %v1172_v24, %v1168_v23  ;;  %v1243_v23 = vld [vmem:[#allocation14 + $0x368] sm:$0xff] }
 0x3e6   : > { %v2331_v28 = vpack.c.bf16 %v1181_v26, %v1177_v25  ;;  %v1241_v24 = vld [vmem:[#allocation14 + $0x358] sm:$0xff] }
 0x3e7   : > { %v1245_v26 = vld [vmem:[#allocation14 + $0x378] sm:$0xff] }
 0x3e8   : > { %2274 = vmatpush1.bf16.msra.mxu1 %v2273_v29  ;;  %v1176_v29 = vld [vmem:[#allocation14 + $0x150] sm:$0xff] }
 0x3e9   : > { %2276 = vmatprep.subr.bf16.mxu1 %v2275_v32  ;;  %v1189_v32 = vld [vmem:[#allocation14 + $0x1b8] sm:$0xff]  ;;  %v2333_v33 = vpack.c.bf16 %v1180_v30, %v1176_v29  ;;  %v2363_v29 = vpack.c.bf16 %v1245_v26, %v1241_v24  ;;  %v1496_v24 = vld [vmem:[#allocation15 + $0x190] sm:$0xff] }
 0x3ea   : > { %v2335_v34 = vpack.c.bf16 %v1189_v32, %v1185_v31  ;;  %v1240_v31 = vld [vmem:[#allocation14 + $0x350] sm:$0xff] }
 0x3eb   : > { %v1244_v32 = vld [vmem:[#allocation14 + $0x370] sm:$0xff] }
 0x3ec   : > { %2278 = vmatpush1.bf16.msra.mxu1 %v2277_v35  ;;  %v1184_v35 = vld [vmem:[#allocation14 + $0x190] sm:$0xff] }
 0x3ed   : > { %2280 = vmatprep.subr.bf16.mxu1 %v2279_v38  ;;  %v1197_v38 = vld [vmem:[#allocation14 + $0x1f8] sm:$0xff]  ;;  %v2337_v39 = vpack.c.bf16 %v1188_v36, %v1184_v35  ;;  %v1251_v35 = vld [vmem:[#allocation14 + $0x3a8] sm:$0xff] }
 0x3ee   : > { %v2339_v40 = vpack.c.bf16 %v1197_v38, %v1193_v37  ;;  %v1249_v36 = vld [vmem:[#allocation14 + $0x398] sm:$0xff] }
 0x3ef   : > { %v1253_v38 = vld [vmem:[#allocation14 + $0x3b8] sm:$0xff] }
 0x3f0   : > { %2282 = vmatpush1.bf16.msra.mxu1 %v2281_v41  ;;  %v1192_v41 = vld [vmem:[#allocation14 + $0x1d0] sm:$0xff] }
 0x3f1   : > { %2284 = vmatprep.subr.bf16.mxu1 %v2283_v44  ;;  %v1205_v44 = vld [vmem:[#allocation14 + $0x238] sm:$0xff]  ;;  %v2341_v45 = vpack.c.bf16 %v1196_v42, %v1192_v41  ;;  %v2367_v41 = vpack.c.bf16 %v1253_v38, %v1249_v36  ;;  %v1467_v38 = vld [vmem:[#allocation15 + $0xa8] sm:$0xff] }
 0x3f2   : > { %v2343_v46 = vpack.c.bf16 %v1205_v44, %v1201_v43  ;;  %v1248_v43 = vld [vmem:[#allocation14 + $0x390] sm:$0xff]  ;;  %v1481_v36 = vld [vmem:[#allocation15 + $0x118] sm:$0xff] }
 0x3f3   : > { %v1252_v44 = vld [vmem:[#allocation14 + $0x3b0] sm:$0xff] }
 0x3f4   : > { %2286 = vmatpush1.bf16.msra.mxu1 %v2285_v47  ;;  %v1200_v47 = vld [vmem:[#allocation14 + $0x210] sm:$0xff] }
 0x3f5   : > { %2288 = vmatprep.subr.bf16.mxu1 %v2287_v50  ;;  %v1213_v50 = vld [vmem:[#allocation14 + $0x278] sm:$0xff]  ;;  %v2345_v1 = vpack.c.bf16 %v1204_v48, %v1200_v47  ;;  %v1259_v47 = vld [vmem:[#allocation14 + $0x3e8] sm:$0xff] }
 0x3f6   : > { %v2347_v51 = vpack.c.bf16 %v1213_v50, %v1209_v49  ;;  %v1257_v48 = vld [vmem:[#allocation14 + $0x3d8] sm:$0xff] }
 0x3f7   : > { %v1261_v50 = vld [vmem:[#allocation14 + $0x3f8] sm:$0xff] }
 0x3f8   : > { %2290 = vmatpush1.bf16.msra.mxu1 %v2289_v52  ;;  %v1208_v52 = vld [vmem:[#allocation14 + $0x250] sm:$0xff] }
 0x4a2   : > { %v1000_v54 = vpop.f32.mrb[2].mxu1 }
 0x4a3   : > { %v1001_v55 = vadd.f32 %v1835_v53, %v1000_v54  ;;  %v2118_v56 = vpop.f32.mrb[3].mxu1  ;;  %v1212_v53 = vld [vmem:[#allocation14 + $0x270] sm:$0xff]  ;;  %v1217_v54 = vld [vmem:[#allocation14 + $0x298] sm:$0xff] }
 0x4a4   : > { %v2349_v56 = vpack.c.bf16 %v1212_v53, %v1208_v52  ;;  %v2371_v52 = vpack.c.bf16 %v1261_v50, %v1257_v48  ;;  %v1483_v48 = vld [vmem:[#allocation15 + $0x128] sm:$0xff] }
 0x4a5   : > { %v1005_v57 = vmul.f32 0.70710677, %v1001_v55  ;;  %v1004_v63 = vmul.f32 0.5, %v1001_v55  ;;  %v1221_v55 = vld [vmem:[#allocation14 + $0x2b8] sm:$0xff] }
 0x4a7   : > { %2571 = verf.f32 %v1005_v57  ;;  %v2351_v57 = vpack.c.bf16 %v1221_v55, %v1217_v54  ;;  %v1256_v54 = vld [vmem:[#allocation14 + $0x3d0] sm:$0xff] }
 0x4a8   : > { %v1260_v55 = vld [vmem:[#allocation14 + $0x3f0] sm:$0xff] }
 0x4b1   : > { %v2572_v60 = vpop.eup %2571 }
 0x4b2   : > { %v1007_v2 = vadd.f32 1.0, %v2572_v60  ;;  %v2353_v60 = vpack.c.bf16 %v1220_v59, %v1216_v58  ;;  %v1463_v58 = vld [vmem:[#allocation15 + $0x88] sm:$0xff]  ;;  %v1494_v59 = vld [vmem:[#allocation15 + $0x180] sm:$0xff] }
 0x4b4   : > { %v1008_v4 = vmul.f32 %v1007_v2, %v1004_v63  ;;  %v1225_v63 = vld [vmem:[#allocation14 + $0x2d8] sm:$0xff]  ;;  %v2291_v2 = vpack.c.bf16 %v1227_v62, %v1223_v61  ;;  %v1495_v61 = vld [vmem:[#allocation15 + $0x188] sm:$0xff] }
 0x4b5   : > { %v2407_v62 = vpack.c.bf16 %v1495_v61, %v1494_v59  ;;  %v1484_v59 = vld [vmem:[#allocation15 + $0x130] sm:$0xff] }
 0x4b6   : > { %1118 = vmatmul.mubr.f32.vlgmr.msra.gmra.mrb[4].mxu0 %v1008_v4  ;;  %v1222_v4 = vld [vmem:[#allocation14 + $0x2c0] sm:$0xff]  ;;  %2292 = vmatprep.subr.bf16.mxu1 %v2291_v2 }
 0x4b7   : > { %2314 = vmatpush1.bf16.msra.mxu0 %v2313_v3  ;;  %v1229_v3 = vld [vmem:[#allocation14 + $0x2f8] sm:$0xff] }
 0x4b8   : > { %2316 = vmatprep.subr.bf16.mxu0 %v2315_v5  ;;  %v1226_v5 = vld [vmem:[#allocation14 + $0x2e0] sm:$0xff]  ;;  %v2355_v0 = vpack.c.bf16 %v1229_v3, %v1225_v63  ;;  %v1043_v63 = vlaneseq }
 0x4b9   : > { %v2293_v6 = vpack.c.bf16 %v1226_v5, %v1222_v4  ;;  %v1041_v4 = vld [vmem:[%s3482_s25] sm:$0x3]  ;;  %s3381_s25 = scalar_lea.hbm %s3485_s6, %s1838_s12 }
 0x4ba   : > { %v3352_v2 = vshrl.u32 %v1043_v63, 7  ;;  %v1471_v63 = vld [vmem:[#allocation15 + $0xc8] sm:$0xff] }
 0x4bb   : > { %2318 = vmatpush1.bf16.msra.mxu0 %v2317_v9  ;;  %v2357_v9 = vpack.c.bf16 %v1228_v8, %v1224_v7  ;;  %2294 = vmatpush1.bf16.msra.mxu1 %v2293_v6 }
 0x4bc   : > { %2320 = vmatprep.subr.bf16.mxu0 %v2319_v10  ;;  %v1231_v10 = vld [vmem:[#allocation14 + $0x308] sm:$0xff]  ;;  %v1045_v3 = vsub.s32 0, %v3352_v2  ;;  %v1049_v5 = vsub.s32 1, %v3352_v2 }
 0x4bd   : > { %v2295_v13 = vpack.c.bf16 %v1235_v11, %v1231_v10 }
 0x4be   : > { %v1050_v6 = vrot.slane %v1041_v4, %v1049_v5 }
 0x4bf   : > { %2322 = vmatpush1.bf16.msra.mxu0 %v2321_v15  ;;  %v1230_v15 = vld [vmem:[#allocation14 + $0x300] sm:$0xff]  ;;  %2296 = vmatprep.subr.bf16.mxu1 %v2295_v13 }
 0x4c0   : > { %2324 = vmatprep.subr.bf16.mxu0 %v2323_v16  ;;  %v1234_v16 = vld [vmem:[#allocation14 + $0x320] sm:$0xff] }
 0x4c1   : > { %v2297_v18 = vpack.c.bf16 %v1234_v16, %v1230_v15  ;;  %v1447_v15 = vld [vmem:[#allocation15 + $0x8] sm:$0xff] }
 0x4c3   : > { %2326 = vmatpush1.bf16.msra.mxu0 %v2325_v21  ;;  %v2361_v21 = vpack.c.bf16 %v1236_v20, %v1232_v19  ;;  %2298 = vmatpush1.bf16.msra.mxu1 %v2297_v18  ;;  %v1478_v18 = vld [vmem:[#allocation15 + $0x100] sm:$0xff]  ;;  %v1479_v19 = vld [vmem:[#allocation15 + $0x108] sm:$0xff]  ;;  %v1464_v20 = vld [vmem:[#allocation15 + $0x90] sm:$0xff] }
 0x4c4   : > { %2328 = vmatprep.subr.bf16.mxu0 %v2327_v22  ;;  %v1239_v22 = vld [vmem:[#allocation14 + $0x348] sm:$0xff] }
 0x4c5   : > { %v2299_v25 = vpack.c.bf16 %v1243_v23, %v1239_v22  ;;  %v1465_v23 = vld [vmem:[#allocation15 + $0x98] sm:$0xff] }
 0x4c7   : > { %2330 = vmatpush1.bf16.msra.mxu0 %v2329_v27  ;;  %v1238_v27 = vld [vmem:[#allocation14 + $0x340] sm:$0xff]  ;;  %2300 = vmatprep.subr.bf16.mxu1 %v2299_v25  ;;  %v1497_v25 = vld [vmem:[#allocation15 + $0x198] sm:$0xff] }
 0x4c8   : > { %2332 = vmatprep.subr.bf16.mxu0 %v2331_v28  ;;  %v1242_v28 = vld [vmem:[#allocation14 + $0x360] sm:$0xff] }
 0x4c9   : > { %v2301_v30 = vpack.c.bf16 %v1242_v28, %v1238_v27  ;;  %v2377_v28 = vpack.c.bf16 %v1447_v15, %v1446_v14  ;;  %v1472_v14 = vld [vmem:[#allocation15 + $0xd0] sm:$0xff]  ;;  %v1473_v15 = vld [vmem:[#allocation15 + $0xd8] sm:$0xff] }
 0x4cb   : > { %2334 = vmatpush1.bf16.msra.mxu0 %v2333_v33  ;;  %v2365_v33 = vpack.c.bf16 %v1244_v32, %v1240_v31  ;;  %2302 = vmatpush1.bf16.msra.mxu1 %v2301_v30  ;;  %v1448_v30 = vld [vmem:[#allocation15 + $0x10] sm:$0xff]  ;;  %v1449_v31 = vld [vmem:[#allocation15 + $0x18] sm:$0xff] }
 0x4cc   : > { %2336 = vmatprep.subr.bf16.mxu0 %v2335_v34  ;;  %v1247_v34 = vld [vmem:[#allocation14 + $0x388] sm:$0xff] }
 0x4cd   : > { %v2303_v37 = vpack.c.bf16 %v1251_v35, %v1247_v34  ;;  %v2411_v34 = vpack.c.bf16 %v1497_v25, %v1496_v24  ;;  %v1480_v35 = vld [vmem:[#allocation15 + $0x110] sm:$0xff]  ;;  %v1489_v24 = vld [vmem:[#allocation15 + $0x158] sm:$0xff] }
 0x4cf   : > { %2338 = vmatpush1.bf16.msra.mxu0 %v2337_v39  ;;  %v1246_v39 = vld [vmem:[#allocation14 + $0x380] sm:$0xff]  ;;  %2304 = vmatprep.subr.bf16.mxu1 %v2303_v37 }
 0x4d0   : > { %2340 = vmatprep.subr.bf16.mxu0 %v2339_v40  ;;  %v1250_v40 = vld [vmem:[#allocation14 + $0x3a0] sm:$0xff] }
 0x4d1   : > { %v2305_v42 = vpack.c.bf16 %v1250_v40, %v1246_v39  ;;  %v1466_v37 = vld [vmem:[#allocation15 + $0xa0] sm:$0xff]  ;;  %v1499_v40 = vld [vmem:[#allocation15 + $0x1a8] sm:$0xff] }
 0x4d2   : > { %v1498_v39 = vld [vmem:[#allocation15 + $0x1a0] sm:$0xff] }
 0x4d3   : > { %2342 = vmatpush1.bf16.msra.mxu0 %v2341_v45  ;;  %v2369_v45 = vpack.c.bf16 %v1252_v44, %v1248_v43  ;;  %2306 = vmatpush1.bf16.msra.mxu1 %v2305_v42  ;;  %v2413_v42 = vpack.c.bf16 %v1481_v36, %v1480_v35  ;;  %v1450_v43 = vld [vmem:[#allocation15 + $0x20] sm:$0xff]  ;;  %v2383_v44 = vpack.c.bf16 %v1467_v38, %v1466_v37  ;;  %v1491_v36 = vld [vmem:[#allocation15 + $0x168] sm:$0xff]  ;;  %v1476_v38 = vld [vmem:[#allocation15 + $0xf0] sm:$0xff] }
 0x4d4   : > { %2344 = vmatprep.subr.bf16.mxu0 %v2343_v46  ;;  %v1255_v46 = vld [vmem:[#allocation14 + $0x3c8] sm:$0xff]  ;;  %v1490_v35 = vld [vmem:[#allocation15 + $0x160] sm:$0xff] }
 0x4d5   : > { %v2307_v49 = vpack.c.bf16 %v1259_v47, %v1255_v46  ;;  %v1451_v46 = vld [vmem:[#allocation15 + $0x28] sm:$0xff]  ;;  %v1482_v47 = vld [vmem:[#allocation15 + $0x120] sm:$0xff]  ;;  %v2433_v37 = vpack.c.bf16 %v1491_v36, %v1490_v35 }
 0x4d6   : > { %v2417_v50 = vpack.c.bf16 %v1483_v48, %v1482_v47  ;;  %v1492_v47 = vld [vmem:[#allocation15 + $0x170] sm:$0xff]  ;;  %v1493_v48 = vld [vmem:[#allocation15 + $0x178] sm:$0xff] }
 0x4d7   : > { %2346 = vmatpush1.bf16.msra.mxu0 %v2345_v1  ;;  %v1254_v1 = vld [vmem:[#allocation14 + $0x3c0] sm:$0xff]  ;;  %2308 = vmatprep.subr.bf16.mxu1 %v2307_v49  ;;  %v2385_v49 = vpack.c.bf16 %v1451_v46, %v1450_v43  ;;  %v1460_v43 = vld [vmem:[#allocation15 + $0x70] sm:$0xff] }
 0x4d8   : > { %2348 = vmatprep.subr.bf16.mxu0 %v2347_v51  ;;  %v1258_v51 = vld [vmem:[#allocation14 + $0x3e0] sm:$0xff] }
 0x4d9   : > { %v2309_v53 = vpack.c.bf16 %v1258_v51, %v1254_v1  ;;  %v1468_v1 = vld [vmem:[#allocation15 + $0xb0] sm:$0xff]  ;;  %v1469_v51 = vld [vmem:[#allocation15 + $0xb8] sm:$0xff] }
 0x4db   : > { %2350 = vmatpush1.bf16.msra.mxu0 %v2349_v56  ;;  %v2373_v56 = vpack.c.bf16 %v1260_v55, %v1256_v54  ;;  %2310 = vmatpush1.bf16.msra.mxu1 %v2309_v53  ;;  %v2387_v53 = vpack.c.bf16 %v1469_v51, %v1468_v1  ;;  %v1501_v54 = vld [vmem:[#allocation15 + $0x1b8] sm:$0xff]  ;;  %v1452_v55 = vld [vmem:[#allocation15 + $0x30] sm:$0xff]  ;;  %v1262_v1 = vld [vmem:[%s3483_s1] sm:$0xf]  ;;  %v1278_v51 = vsub.s32 3, %v3352_v2  ;;  %s2817_s1 = scalar_lea.vmem %s2816_s27, 256 }
 0x4dc   : > { %2352 = vmatprep.subr.bf16.mxu0 %v2351_v57  ;;  %v1462_v57 = vld [vmem:[#allocation15 + $0x80] sm:$0xff]  ;;  %p2819_p3 = scmp.lt.s32.totalorder %s2817_s1, %s2811_s17 }
 0x4de   : > { %p2820_p6 = por %p2819_p3, %p2818_p2 }
 0x4df   : > { %2354 = vmatpush1.bf16.msra.mxu0 %v2353_v60  ;;  %v2375_v60 = vpack.c.bf16 %v1463_v58, %v1462_v57 }
 0x4e0   : > { %2356 = vmatprep.subr.bf16.mxu0 %v2355_v0  ;;  %v1046_v0 = vrot.slane %v1041_v4, %v1045_v3  ;;  %v1502_v4 = vld [vmem:[#allocation15 + $0x1c0] sm:$0xff]  ;;  %p2821_p10 = pnand %p2820_p6, %p2814_p0 }
 0x4e1   : > { %2376 = vmatprep.subr.bf16.mxu1 %v2375_v60  ;;  %v1485_v60 = vld [vmem:[#allocation15 + $0x138] sm:$0xff] }
 0x4e2   : > { %v2421_v61 = vpack.c.bf16 %v1485_v60, %v1484_v59 }
 0x4e3   : > { %2358 = vmatpush1.bf16.msra.mxu0 %v2357_v9 }
 0x4e4   : > { %2360 = vmatprep.subr.bf16.mxu0 %v2359_v17 }
 0x4e7   : > { %2362 = vmatpush1.bf16.msra.mxu0 %v2361_v21 }
 0x4e8   : > { %2364 = vmatprep.subr.bf16.mxu0 %v2363_v29  ;;  %v2409_v29 = vpack.c.bf16 %v1479_v19, %v1478_v18  ;;  %v1505_v18 = vld [vmem:[#allocation15 + $0x1d8] sm:$0xff]  ;;  %v1456_v19 = vld [vmem:[#allocation15 + $0x50] sm:$0xff] }
 0x4eb   : > { %2366 = vmatpush1.bf16.msra.mxu0 %v2365_v33  ;;  %v2379_v33 = vpack.c.bf16 %v1465_v23, %v1464_v20  ;;  %v1457_v20 = vld [vmem:[#allocation15 + $0x58] sm:$0xff]  ;;  %v1488_v23 = vld [vmem:[#allocation15 + $0x150] sm:$0xff] }
 0x4ec   : > { %2368 = vmatprep.subr.bf16.mxu0 %v2367_v41  ;;  %v2381_v41 = vpack.c.bf16 %v1449_v31, %v1448_v30  ;;  %v2429_v25 = vpack.c.bf16 %v1489_v24, %v1488_v23  ;;  %v1507_v30 = vld [vmem:[#allocation15 + $0x1e8] sm:$0xff]  ;;  %v1458_v31 = vld [vmem:[#allocation15 + $0x60] sm:$0xff] }
 0x4ed   : > { %v1836_v23 = vld [vmem:[%s3484_s8] ss:$0 sm:$0xff] }
 0x4ef   : > { %2370 = vmatpush1.bf16.msra.mxu0 %v2369_v45  ;;  %v2415_v45 = vpack.c.bf16 %v1499_v40, %v1498_v39  ;;  %v1477_v39 = vld [vmem:[#allocation15 + $0xf8] sm:$0xff]  ;;  %v1508_v40 = vld [vmem:[#allocation15 + $0x1f0] sm:$0xff] }
 0x4f0   : > { %2372 = vmatprep.subr.bf16.mxu0 %v2371_v52  ;;  %v1500_v52 = vld [vmem:[#allocation15 + $0x1b0] sm:$0xff] }
 0x4f1   : > { %v2419_v57 = vpack.c.bf16 %v1501_v54, %v1500_v52  ;;  %v1267_v52 = vrot.slane %v1262_v1, %v1045_v3  ;;  %v1271_v54 = vrot.slane %v1262_v1, %v1049_v5 }
 0x4f3   : > { %2374 = vmatpush1.bf16.msra.mxu0 %v2373_v56  ;;  %v1453_v56 = vld [vmem:[#allocation15 + $0x38] sm:$0xff] }
 0x4f4   : > { %2408 = vmatprep.subr.bf16.mxu0 %v2407_v62  ;;  %v2389_v58 = vpack.c.bf16 %v1453_v56, %v1452_v55  ;;  %v1470_v62 = vld [vmem:[#allocation15 + $0xc0] sm:$0xff]  ;;  %v1279_v55 = vrot.slane %v1262_v1, %v1278_v51 }
 0x589   : > { %v1119_v7 = vpop.f32.mrb[4].mxu0 }
 0x58a   : > { %v1120_v8 = vadd.f32 %v1119_v7, %v1046_v0  ;;  %v1121_v9 = vpop.f32.mrb[5].mxu0  ;;  %v2391_v0 = vpack.c.bf16 %v1471_v63, %v1470_v62  ;;  %v1454_v7 = vld [vmem:[#allocation15 + $0x40] sm:$0xff] }
 0x58b   : > { %v1122_v10 = vadd.f32 %v1121_v9, %v1050_v6  ;;  %v1503_v6 = vld [vmem:[#allocation15 + $0x1c8] sm:$0xff] }
 0x58c   : > { %v1126_v11 = vmul.f32 0.70710677, %v1120_v8  ;;  %v1124_v26 = vmul.f32 0.5, %v1120_v8  ;;  %v1455_v8 = vld [vmem:[#allocation15 + $0x48] sm:$0xff]  ;;  %v2423_v9 = vpack.c.bf16 %v1503_v6, %v1502_v4 }
 0x58d   : > { %v1127_v12 = vmul.f32 0.70710677, %v1122_v10  ;;  %v1125_v21 = vmul.f32 0.5, %v1122_v10  ;;  %v2393_v10 = vpack.c.bf16 %v1455_v8, %v1454_v7 }
 0x58e   : > { %2573 = verf.f32 %v1126_v11  ;;  %v1486_v11 = vld [vmem:[#allocation15 + $0x140] sm:$0xff] }
 0x58f   : > { %2575 = verf.f32 %v1127_v12  ;;  %v1487_v12 = vld [vmem:[#allocation15 + $0x148] sm:$0xff] }
 0x598   : > { %v2574_v13 = vpop.eup %2573 }
 0x599   : > { %v2576_v16 = vpop.eup %2575  ;;  %v1130_v17 = vadd.f32 1.0, %v2574_v13  ;;  %v2425_v13 = vpack.c.bf16 %v1487_v12, %v1486_v11 }
 0x59a   : > { %v1131_v22 = vadd.f32 1.0, %v2576_v16  ;;  %v1504_v16 = vld [vmem:[#allocation15 + $0x1d0] sm:$0xff] }
 0x59b   : > { %v1132_v32 = vmul.f32 %v1130_v17, %v1124_v26  ;;  %v2395_v17 = vpack.c.bf16 %v1473_v15, %v1472_v14  ;;  %v1474_v26 = vld [vmem:[#allocation15 + $0xe0] sm:$0xff] }
 0x59c   : > { %v1133_v27 = vmul.f32 %v1131_v22, %v1125_v21  ;;  %v2427_v21 = vpack.c.bf16 %v1505_v18, %v1504_v16  ;;  %v2397_v22 = vpack.c.bf16 %v1457_v20, %v1456_v19 }
 0x59e   : > { %1348 = vmatprep.mubr.f32.mxu1 %v1133_v27  ;;  %1419 = vmatprep.mubr.f32.mxu0 %v1133_v27  ;;  %v1475_v27 = vld [vmem:[#allocation15 + $0xe8] sm:$0xff] }
 0x59f   : > { %1349 = vmatmul.mubr.f32.vlgmr.msra.gmra.mrb[4].mxu1 %v1132_v32  ;;  %1420 = vmatmul.mubr.f32.vlgmr.msra.gmra.mrb[6].mxu0 %v1132_v32  ;;  %v1459_v32 = vld [vmem:[#allocation15 + $0x68] sm:$0xff] }
 0x5a0   : > { %2378 = vmatpush3.bf16.msra.mxu1 %v2377_v28  ;;  %2410 = vmatpush3.bf16.msra.mxu0 %v2409_v29  ;;  %v1506_v28 = vld [vmem:[#allocation15 + $0x1e0] sm:$0xff]  ;;  %v2399_v29 = vpack.c.bf16 %v1475_v27, %v1474_v26 }
 0x5a1   : > { %2380 = vmatprep.subr.bf16.mxu1 %v2379_v33  ;;  %2412 = vmatprep.subr.bf16.mxu0 %v2411_v34  ;;  %v2431_v33 = vpack.c.bf16 %v1507_v30, %v1506_v28  ;;  %v2401_v34 = vpack.c.bf16 %v1459_v32, %v1458_v31 }
 0x5a4   : > { %2382 = vmatpush3.bf16.msra.mxu1 %v2381_v41  ;;  %2414 = vmatpush3.bf16.msra.mxu0 %v2413_v42  ;;  %v2403_v41 = vpack.c.bf16 %v1477_v39, %v1476_v38  ;;  %v1509_v42 = vld [vmem:[#allocation15 + $0x1f8] sm:$0xff] }
 0x5a5   : > { %2384 = vmatprep.subr.bf16.mxu1 %v2383_v44  ;;  %2416 = vmatprep.subr.bf16.mxu0 %v2415_v45  ;;  %v1461_v44 = vld [vmem:[#allocation15 + $0x78] sm:$0xff]  ;;  %v2435_v45 = vpack.c.bf16 %v1509_v42, %v1508_v40 }
 0x5a6   : > { %v2405_v46 = vpack.c.bf16 %v1461_v44, %v1460_v43 }
 0x5a8   : > { %2386 = vmatpush3.bf16.msra.mxu1 %v2385_v49  ;;  %2418 = vmatpush3.bf16.msra.mxu0 %v2417_v50  ;;  %v2437_v49 = vpack.c.bf16 %v1493_v48, %v1492_v47  ;;  %v1274_v50 = vsub.s32 2, %v3352_v2 }
 0x5a9   : > { %2388 = vmatprep.subr.bf16.mxu1 %v2387_v53  ;;  %2420 = vmatprep.subr.bf16.mxu0 %v2419_v57 }
 0x5aa   : > { %v1275_v53 = vrot.slane %v1262_v1, %v1274_v50 }
 0x5ac   : > { %2390 = vmatpush3.bf16.msra.mxu1 %v2389_v58  ;;  %2422 = vmatpush3.bf16.msra.mxu0 %v2421_v61 }
 0x5ad   : > { %2392 = vmatprep.subr.bf16.mxu1 %v2391_v0  ;;  %2424 = vmatprep.subr.bf16.mxu0 %v2423_v9 }
 0x5b0   : > { %2394 = vmatpush3.bf16.msra.mxu1 %v2393_v10  ;;  %2426 = vmatpush3.bf16.msra.mxu0 %v2425_v13 }
 0x5b1   : > { %2396 = vmatprep.subr.bf16.mxu1 %v2395_v17  ;;  %2428 = vmatprep.subr.bf16.mxu0 %v2427_v21 }
 0x5b4   : > { %2398 = vmatpush3.bf16.msra.mxu1 %v2397_v22  ;;  %2430 = vmatpush3.bf16.msra.mxu0 %v2429_v25 }
 0x5b5   : > { %2400 = vmatprep.subr.bf16.mxu1 %v2399_v29  ;;  %2432 = vmatprep.subr.bf16.mxu0 %v2431_v33 }
 0x5b8   : > { %2402 = vmatpush3.bf16.msra.mxu1 %v2401_v34  ;;  %2434 = vmatpush3.bf16.msra.mxu0 %v2433_v37 }
 0x5b9   : > { %2404 = vmatprep.subr.bf16.mxu1 %v2403_v41  ;;  %2436 = vmatprep.subr.bf16.mxu0 %v2435_v45 }
 0x5bc   : > { %2406 = vmatpush3.bf16.msra.mxu1 %v2405_v46  ;;  %2438 = vmatpush3.bf16.msra.mxu0 %v2437_v49 }
 0x672   : > { %v1350_v56 = vpop.f32.mrb[4].mxu1  ;;  %v1421_v57 = vpop.f32.mrb[6].mxu0 }
 0x673   : > { %v1351_v58 = vadd.f32 %v1350_v56, %v1267_v52  ;;  %v1422_v59 = vadd.f32 %v1421_v57, %v1275_v53  ;;  %v1352_v60 = vpop.f32.mrb[5].mxu1  ;;  %v1423_v61 = vpop.f32.mrb[7].mxu0 }
 0x674   : > { %v1353_v62 = vadd.f32 %v1352_v60, %v1271_v54  ;;  %v1424_v63 = vadd.f32 %v1423_v61, %v1279_v55 }
 0x675   : > { %v1430_v4 = vmul.f32 0.70710677, %v1351_v58  ;;  %v1432_v0 = vmul.f32 0.70710677, %v1422_v59  ;;  %v1426_v13 = vmul.f32 0.5, %v1351_v58  ;;  %v1428_v16 = vmul.f32 0.5, %v1422_v59 }
 0x676   : > { %v1431_v6 = vmul.f32 0.70710677, %v1353_v62  ;;  %v1433_v7 = vmul.f32 0.70710677, %v1424_v63  ;;  %v1427_v11 = vmul.f32 0.5, %v1353_v62  ;;  %v1429_v14 = vmul.f32 0.5, %v1424_v63 }
 0x677   : > { %2577 = verf.f32 %v1430_v4 }
 0x678   : > { %2579 = verf.f32 %v1432_v0 }
 0x679   : > { %2581 = verf.f32 %v1431_v6 }
 0x67a   : > { %2583 = verf.f32 %v1433_v7 }
 0x681   : > { %v2578_v3 = vpop.eup %2577 }
 0x682   : > { %v2580_v2 = vpop.eup %2579  ;;  %v1438_v8 = vadd.f32 1.0, %v2578_v3 }
 0x683   : > { %v2582_v5 = vpop.eup %2581  ;;  %v1440_v10 = vadd.f32 1.0, %v2580_v2 }
 0x684   : > { %v2584_v9 = vpop.eup %2583  ;;  %v1439_v12 = vadd.f32 1.0, %v2582_v5  ;;  %v1442_v18 = vmul.f32 %v1438_v8, %v1426_v13 }
 0x685   : > { %v1441_v15 = vadd.f32 1.0, %v2584_v9  ;;  %v1444_v20 = vmul.f32 %v1440_v10, %v1428_v16 }
 0x686   : > { %v1443_v17 = vmul.f32 %v1439_v12, %v1427_v11 }
 0x687   : > { %v1445_v19 = vmul.f32 %v1441_v15, %v1429_v14 }
 0x688   : > { %1581 = vmatprep.mubr.f32.mxu1 %v1443_v17 }
 0x689   : > { %1651 = vmatprep.mubr.f32.mxu0 %v1445_v19  ;;  %1582 = vmatmul.mubr.f32.vlgmr.msra.gmra.mrb[6].mxu1 %v1442_v18 }
 0x68a   : > { %1652 = vmatmul.mubr.f32.vlgmr.msra.gmra.mrb[8].mxu0 %v1444_v20 }
 0x75c   : > { %v1941_v21 = vpop.f32.mrb[6].mxu1 }
 0x75d   : > { %v1976_v22 = vpop.f32.mrb[8].mxu0  ;;  %v1942_v24 = vpop.f32.mrb[7].mxu1 }
 0x75e   : > { %v1943_v25 = vadd.f32 %v1942_v24, %v1941_v21  ;;  %v1977_v26 = vpop.f32.mrb[9].mxu0 }
 0x75f   : > { %v1978_v27 = vadd.f32 %v1977_v26, %v1976_v22 }
 0x760   : > { %v1584_v28 = vadd.f32 %v1943_v25, %v1836_v23 }
 0x762   : > { %v1654_v29 = vadd.f32 %v1978_v27, %v1584_v28 }
 0x764   : > { %1658 = vst.msk [vmem:[%s611_s10] sm:$0xff] %vm1657_vm2, %v1654_v29 }
 0x765   : > { %2824 = shalt.err (!%p2821_p10)
}
 0x766   : > { %s2825_s28 = scalar_lea.hbm %s3381_s25, 128  ;;  %s2829_s8 = scalar_lea.hbm %s3485_s6, 256 }
 0x767   : > { %p2826_p11 = scmp.ne.s32.totalorder %s3381_s25, %s2825_s28  ;;  %p2830_p9 = scmp.lt.u32.totalorder %s3381_s25, %s3485_s6 }
 0x768   : > { %p2831_p7 = scmp.lt.u32.totalorder %s2829_s8, %s2825_s28  ;;  %p2833_p12 = scmp.lt.u32.totalorder %s2825_s28, %s3381_s25 }
 0x769   : > { %p2827_p8 = pnand %p2826_p11, %p3486_p1 }
 0x76a   : > { %p2832_p4 = por %p2831_p7, %p2830_p9 }
 0x76b   : > { %p2828_p5 = pneg %p2827_p8 }
 0x76c   : > { %p2834_p13 = por %p2833_p12, %p2832_p4 }
 0x76e   : > { %p2835_p0 = pnand %p2834_p13, %p2828_p5 }
 0x770   : > { %2838 = shalt.err (!%p2835_p0)
}
 0x771   : > { %2469 = dma.vmem_to_hbm [thread:$0]  (%p3486_p1), %s3383_s22, 128, %s3381_s25, %s1660_s23  }
 0x772 PF: > { %s1685_s16 = sand.u32 1, %s2881_s18   ;;  %p3487_p2 = scmp.ne.s32.totalorder %s3468_s5, 0 }
 0x773   : > { %p3488_p3 = scmp.ge.s32.totalorder %s2893_s21, 2  ;;  %s1686_s4 = scalar_lea.sflag [#allocation5], %s1685_s16 }
 0x775   : > { %p2498_p6 = pnand %p3488_p3, %p3487_p2 }
 0x777   : > { %2876 = dma.done.wait (!%p2498_p6), %s1686_s4, 128  }
 0x778   : > { %2878 = vsyncadd (!%p2498_p6), %s1686_s4, 4294967168  ;;  %p32_p10 = scmp.ge.s32.totalorder %s3202_s26, 4   ;;  %s3489_s18 = smov %s2885_s19 }
 0x779   : > { %s3490_s19 = smov %s2889_s20  ;;  %s3491_s20 = smov %s3214_s30 }
 0x77a   : > { %s3492_s21 = smov %s3202_s26  ;;  %34 = sbr.rel (!%p32_p10) target bundleno = 19 (0x13), region = 153 }
 0x781   :  { %1691 = vsyncpa [#allocation4], 1 }
 0x782   :  { %1693 = vsyncpa [#allocation4 + $0x1], 1 }
 0x783   :  { %1694 = vsyncpa [#allocation7], 1 }
 0x784   :  { %1695 = vsyncpa [#allocation10], 1 }
 0x785   :  { %1696 = vsyncpa [#allocation13], 1 }
 0x786   :  { %1697 = vsyncpa [#allocation16], 1 }
 0x787   :  { %1698 = vsyncpa [#allocation5], 1 }
 0x788   :  { %1700 = vsyncpa [#allocation5 + $0x1], 1 }

</bundles_post_ra>
